<compile_context>
chip_gen: v7x
topology: tpu7x:2x2x1
jax: 0.10.0
libtpu: 0.0.40
codegen_flags: <defaults>
</compile_context>

<pallas_src>
import jax
import jax.numpy as jnp
from jax.experimental import pallas as pl
from jax.experimental.pallas import tpu as pltpu

BN_EPS = 1e-5


def mlp_kernel(x_ref, w1t_ref, gamma_ref, beta_ref, w2t_ref, b2_ref, o_ref):
    # Linear 1 on the MXU: bf16 operands, f32 accumulate. Canonical [K, N] RHS
    # (pre-transposed in the wrapper), so no in-kernel weight transpose.
    # b1 is omitted: provably cancelled by train-mode BN.
    h = jnp.dot(x_ref[...], w1t_ref[...],
                preferred_element_type=jnp.float32)          # [B, H] f32

    # BatchNorm1d (training mode: batch statistics, biased variance).
    # Single traversal of h: accumulate E[x] and E[x^2]; clamp the variance
    # against E[x^2]-mean^2 cancellation. Per-feature [1, H] math is one vreg.
    inv_b = 1.0 / h.shape[0]
    mean = jnp.sum(h, axis=0, keepdims=True) * inv_b          # [1, H]
    msq = jnp.sum(h * h, axis=0, keepdims=True) * inv_b       # [1, H]
    var = jnp.maximum(msq - mean * mean, 0.0)                 # [1, H]
    scale = gamma_ref[...] * jax.lax.rsqrt(var + BN_EPS)      # [1, H]
    shift = beta_ref[...] - mean * scale                      # [1, H]

    # Folded BN affine + ReLU: one multiply-add pass over [B, H].
    h = jnp.maximum(h * scale + shift, 0.0)

    # Linear 2 on the MXU: bf16 operands ([H, D] RHS, pre-transposed),
    # f32 accumulate; bias add and final cast in f32.
    out = jnp.dot(h.astype(jnp.bfloat16), w2t_ref[...],
                  preferred_element_type=jnp.float32)         # [B, D] f32
    o_ref[...] = (out + b2_ref[...]).astype(o_ref.dtype)


@jax.jit
def mlp_pallas(x, w1, b1, gamma, beta, w2, b2):
    """x: [B, D]; w1: [2D, D], w2: [D, 2D] (torch layout at the API).

    b1 is accepted to mirror the nn.Module parameters but is not used: a
    per-feature constant shift before train-mode BatchNorm has no effect on
    the output (mean subtraction removes it; variance is shift-invariant).
    """
    del b1
    B, D = x.shape
    H = w1.shape[0]  # 2 * D

    # One-time (per jitted call, amortized) transpose + bf16 cast of the
    # weights so the kernel sees canonical [K, N] RHS operands and the weight
    # DMA is halved. Activations also go in as bf16; accumulation stays f32.
    x_bf = x.astype(jnp.bfloat16)
    w1t = w1.T.astype(jnp.bfloat16)          # [D, H]
    w2t = w2.T.astype(jnp.bfloat16)          # [H, D]

    # (1, F)-shaped f32 params broadcast along the batch (sublane) axis.
    gamma_2d = gamma.reshape(1, H)
    beta_2d = beta.reshape(1, H)
    b2_2d = b2.reshape(1, D)

    flops = 4 * B * D * H  # two GEMMs: 2*B*D*H each
    bytes_accessed = (
        x_bf.size * 2 + w1t.size * 2 + w2t.size * 2          # bf16 operands
        + (gamma.size + beta.size + b2.size) * 4              # f32 params
        + B * D * x.dtype.itemsize                            # output
    )
    cost = pl.CostEstimate(flops=flops, transcendentals=H,
                           bytes_accessed=bytes_accessed)

    # Small problem: everything fits comfortably in VMEM (< 1 MiB live),
    # single grid point, full-array blocks. See TODO at top for the tiled
    # (grid over H, f32 accumulator) plan at large B/D.
    return pl.pallas_call(
        mlp_kernel,
        out_shape=jax.ShapeDtypeStruct((B, D), x.dtype),
        in_specs=[pl.BlockSpec(memory_space=pltpu.MemorySpace.VMEM)] * 6,
        out_specs=pl.BlockSpec(memory_space=pltpu.MemorySpace.VMEM),
        compiler_params=pltpu.CompilerParams(vmem_limit_bytes=32 * 1024 * 1024),
        cost_estimate=cost,
    )(x_bf, w1t, gamma_2d, beta_2d, w2t, b2_2d)


def mlp_ref(x, w1, b1, gamma, beta, w2, b2):
    """Pure-JAX f32 reference mirroring the PyTorch forward (training-mode BN),
    including the b1 add, to verify the kernel's b1-cancellation and bf16 MXU
    numerics stay within tolerance."""
    h = x @ w1.T + b1
    mean = jnp.mean(h, axis=0, keepdims=True)
    var = jnp.mean((h - mean) ** 2, axis=0, keepdims=True)
    h = (h - mean) / jnp.sqrt(var + BN_EPS)
    h = h * gamma + beta
    h = jnp.maximum(h, 0.0)
    return h @ w2.T + b2


if __name__ == "__main__":
    # Lane-dense feature dims (D = 128, H = 256) and a batch large enough to
    # fill MXU rows on v6e/v7x (256) — at B=8 the kernel is pure overhead.
    embed_dim = 128
    hidden = embed_dim * 2
    batch = 256

    key = jax.random.PRNGKey(0)
    kx, kw1, kb1, kw2, kb2 = jax.random.split(key, 5)

    x = jax.random.normal(kx, (batch, embed_dim), dtype=jnp.float32)

    # Deterministic parameter init (PyTorch-style uniform bounds, seeded here).
    bound1 = 1.0 / jnp.sqrt(embed_dim)
    w1 = jax.random.uniform(kw1, (hidden, embed_dim), jnp.float32, -bound1, bound1)
    b1 = jax.random.uniform(kb1, (hidden,), jnp.float32, -bound1, bound1)
    bound2 = 1.0 / jnp.sqrt(hidden)
    w2 = jax.random.uniform(kw2, (embed_dim, hidden), jnp.float32, -bound2, bound2)
    b2 = jax.random.uniform(kb2, (embed_dim,), jnp.float32, -bound2, bound2)
    gamma = jnp.ones((hidden,), jnp.float32)   # BN weight init
    beta = jnp.zeros((hidden,), jnp.float32)   # BN bias init

    out = mlp_pallas(x, w1, b1, gamma, beta, w2, b2)
    out = jax.block_until_ready(out)

    ref = mlp_ref(x, w1, b1, gamma, beta, w2, b2)
    assert out.shape == (batch, embed_dim)
    # bf16 MXU operands (f32 accumulate) => no longer bit-for-bit f32; loosened
    # tolerance per review.
    assert jnp.allclose(out, ref, atol=5e-2, rtol=5e-2), (
        "mismatch vs reference; max abs diff = %s" % jnp.max(jnp.abs(out - ref)))

    print("KERNEL_OK")
</pallas_src>

<mosaic_0001>
module attributes {stable_mosaic.version = 11 : i64} {
  func.func @mlp_kernel(%arg0: memref<256x128xbf16, #tpu.memory_space<vmem>>, %arg1: memref<128x256xbf16, #tpu.memory_space<vmem>>, %arg2: memref<1x256xf32, #tpu.memory_space<vmem>>, %arg3: memref<1x256xf32, #tpu.memory_space<vmem>>, %arg4: memref<256x128xbf16, #tpu.memory_space<vmem>>, %arg5: memref<1x128xf32, #tpu.memory_space<vmem>>, %arg6: memref<256x128xf32, #tpu.memory_space<vmem>>) attributes {dimension_semantics = [], scalar_prefetch = 0 : i64, scratch_operands = 0 : i64, tpu.core_type = #tpu.core_type<tc>} {
    %c0 = arith.constant 0 : index
    %c0_0 = arith.constant 0 : index
    %0 = vector.load %arg0[%c0, %c0_0] : memref<256x128xbf16, #tpu.memory_space<vmem>>, vector<256x128xbf16>
    %c0_1 = arith.constant 0 : index
    %c0_2 = arith.constant 0 : index
    %1 = vector.load %arg1[%c0_1, %c0_2] : memref<128x256xbf16, #tpu.memory_space<vmem>>, vector<128x256xbf16>
    %cst = arith.constant dense<0.000000e+00> : vector<256x256xf32>
    %2 = tpu.matmul %0, %1, %cst {dimension_numbers = #tpu.dot_dimension_numbers<[1], [0], [0], [1], [0, 0, 1, 1], [], []>} : vector<256x128xbf16>, vector<128x256xbf16>, vector<256x256xf32> -> vector<256x256xf32>
    %cst_3 = arith.constant dense<0.000000e+00> : vector<256xf32>
    %3 = vector.multi_reduction <add>, %2, %cst_3 [0] : vector<256x256xf32> to vector<256xf32>
    %4 = vector.shape_cast %3 : vector<256xf32> to vector<1x256xf32>
    %cst_4 = arith.constant 3.906250e-03 : f32
    %5 = vector.broadcast %cst_4 : f32 to vector<1x256xf32>
    %6 = arith.mulf %4, %5 : vector<1x256xf32>
    %7 = arith.mulf %2, %2 : vector<256x256xf32>
    %cst_5 = arith.constant dense<0.000000e+00> : vector<256xf32>
    %8 = vector.multi_reduction <add>, %7, %cst_5 [0] : vector<256x256xf32> to vector<256xf32>
    %9 = vector.shape_cast %8 : vector<256xf32> to vector<1x256xf32>
    %cst_6 = arith.constant 3.906250e-03 : f32
    %10 = vector.broadcast %cst_6 : f32 to vector<1x256xf32>
    %11 = arith.mulf %9, %10 : vector<1x256xf32>
    %12 = arith.mulf %6, %6 : vector<1x256xf32>
    %13 = arith.subf %11, %12 : vector<1x256xf32>
    %cst_7 = arith.constant 0.000000e+00 : f32
    %14 = vector.broadcast %cst_7 : f32 to vector<1x256xf32>
    %15 = arith.maximumf %13, %14 : vector<1x256xf32>
    %c0_8 = arith.constant 0 : index
    %c0_9 = arith.constant 0 : index
    %16 = vector.load %arg2[%c0_8, %c0_9] : memref<1x256xf32, #tpu.memory_space<vmem>>, vector<1x256xf32>
    %cst_10 = arith.constant 9.99999974E-6 : f32
    %17 = vector.broadcast %cst_10 : f32 to vector<1x256xf32>
    %18 = arith.addf %15, %17 : vector<1x256xf32>
    %19 = math.rsqrt %18 : vector<1x256xf32>
    %20 = arith.mulf %16, %19 : vector<1x256xf32>
    %c0_11 = arith.constant 0 : index
    %c0_12 = arith.constant 0 : index
    %21 = vector.load %arg3[%c0_11, %c0_12] : memref<1x256xf32, #tpu.memory_space<vmem>>, vector<1x256xf32>
    %22 = arith.mulf %6, %20 : vector<1x256xf32>
    %23 = arith.subf %21, %22 : vector<1x256xf32>
    %24 = vector.broadcast %20 : vector<1x256xf32> to vector<256x256xf32>
    %25 = arith.mulf %2, %24 : vector<256x256xf32>
    %26 = vector.broadcast %23 : vector<1x256xf32> to vector<256x256xf32>
    %27 = arith.addf %25, %26 : vector<256x256xf32>
    %cst_13 = arith.constant 0.000000e+00 : f32
    %28 = vector.broadcast %cst_13 : f32 to vector<256x256xf32>
    %29 = arith.maximumf %27, %28 : vector<256x256xf32>
    %30 = arith.truncf %29 : vector<256x256xf32> to vector<256x256xbf16>
    %c0_14 = arith.constant 0 : index
    %c0_15 = arith.constant 0 : index
    %31 = vector.load %arg4[%c0_14, %c0_15] : memref<256x128xbf16, #tpu.memory_space<vmem>>, vector<256x128xbf16>
    %cst_16 = arith.constant dense<0.000000e+00> : vector<256x128xf32>
    %32 = tpu.matmul %30, %31, %cst_16 {dimension_numbers = #tpu.dot_dimension_numbers<[1], [0], [0], [1], [0, 0, 1, 1], [], []>} : vector<256x256xbf16>, vector<256x128xbf16>, vector<256x128xf32> -> vector<256x128xf32>
    %c0_17 = arith.constant 0 : index
    %c0_18 = arith.constant 0 : index
    %33 = vector.load %arg5[%c0_17, %c0_18] : memref<1x128xf32, #tpu.memory_space<vmem>>, vector<1x128xf32>
    %34 = vector.broadcast %33 : vector<1x128xf32> to vector<256x128xf32>
    %35 = arith.addf %32, %34 : vector<256x128xf32>
    %c0_19 = arith.constant 0 : index
    %c0_20 = arith.constant 0 : index
    %36 = vector.load %arg6[%c0_19, %c0_20] : memref<256x128xf32, #tpu.memory_space<vmem>>, vector<256x128xf32>
    tpu.vector_store %arg6[%c0_19, %c0_20], %35 {strides = array<i32>} : memref<256x128xf32, #tpu.memory_space<vmem>>, vector<256x128xf32>,
    return
  }
}

</mosaic_0001>

<bundles_post_ra>
// kernel: mlp_pallas.1
= control target key start
LH: loop header
LB: loop body
LE: loop exit
PB: predicated region body
PF: predicated region fallthrough
CT: control target
= control target key end

     0   :  { %v1550_v2 = vmov 0   ;;  %s2653_s0 = inlined_call_operand.vmem [shape: bf16[256,128], index: 0, kind: input, shape index: {}]   ;;  %s2654_s1 = inlined_call_operand.vmem [shape: bf16[128,256], index: 1, kind: input, shape index: {}]   ;;  %s2655_s2 = inlined_call_operand.vmem [shape: f32[1,256], index: 2, kind: input, shape index: {}]   ;;  %s2656_s3 = inlined_call_operand.vmem [shape: f32[1,256], index: 3, kind: input, shape index: {}]   ;;  %s2657_s4 = inlined_call_operand.vmem [shape: bf16[256,128], index: 4, kind: input, shape index: {}]   ;;  %s2658_s5 = inlined_call_operand.vmem [shape: f32[1,128], index: 5, kind: input, shape index: {}]   ;;  %s2659_s6 = inlined_call_operand.hbm [shape: f32[256,128], index: 6, kind: output, shape index: {}]  }
   0x1   :  { %v1466_v0 = vld [vmem:[%s2654_s1 + $0x4] ss:$8 sps:$4 sm:$0xff]   ;;  %v1468_v1 = vld [vmem:[%s2654_s1] ss:$8 sps:$4 sm:$0xff]   ;;  %281 = vmatprep.mubr.bf16.mxu0 %v1550_v2  ;;  %v1469_v3 = vld [vmem:[%s2654_s1 + $0x14] ss:$8 sps:$4 sm:$0xff]  }
   0x2   :  { %249 = vmatprep.subr.bf16.mxu0 %v1466_v0  ;;  %v1471_v4 = vld [vmem:[%s2654_s1 + $0x10] ss:$8 sps:$4 sm:$0xff]   ;;  %v1472_v5 = vld [vmem:[%s2654_s1 + $0x24] ss:$8 sps:$4 sm:$0xff]   ;;  %v1474_v6 = vld [vmem:[%s2654_s1 + $0x20] ss:$8 sps:$4 sm:$0xff]  }
   0x3   :  { %250 = vmatpush1.bf16.msra.mxu0 %v1468_v1  ;;  %v1475_v7 = vld [vmem:[%s2654_s1 + $0x34] ss:$8 sps:$4 sm:$0xff]   ;;  %v1477_v8 = vld [vmem:[%s2654_s1 + $0x30] ss:$8 sps:$4 sm:$0xff]   ;;  %v1478_v9 = vld [vmem:[%s2654_s1 + $0x44] ss:$8 sps:$4 sm:$0xff]  }
   0x4   :  { %251 = vmatprep.subr.bf16.mxu0 %v1469_v3  ;;  %v1480_v10 = vld [vmem:[%s2654_s1 + $0x40] ss:$8 sps:$4 sm:$0xff]   ;;  %v1481_v11 = vld [vmem:[%s2654_s1 + $0x54] ss:$8 sps:$4 sm:$0xff]   ;;  %v1483_v12 = vld [vmem:[%s2654_s1 + $0x50] ss:$8 sps:$4 sm:$0xff]  }
   0x5   :  { %v1484_v13 = vld [vmem:[%s2654_s1 + $0x64] ss:$8 sps:$4 sm:$0xff]   ;;  %v1486_v14 = vld [vmem:[%s2654_s1 + $0x60] ss:$8 sps:$4 sm:$0xff]   ;;  %v1487_v15 = vld [vmem:[%s2654_s1 + $0x74] ss:$8 sps:$4 sm:$0xff]  }
   0x6   :  { %v1489_v16 = vld [vmem:[%s2654_s1 + $0x70] ss:$8 sps:$4 sm:$0xff]   ;;  %v1490_v17 = vld [vmem:[%s2653_s0] sm:$0xff]  }
   0x7   :  { %252 = vmatpush1.bf16.msra.mxu0 %v1471_v4 }
   0x8   :  { %253 = vmatprep.subr.bf16.mxu0 %v1472_v5 }
   0xb   :  { %254 = vmatpush1.bf16.msra.mxu0 %v1474_v6 }
   0xc   :  { %255 = vmatprep.subr.bf16.mxu0 %v1475_v7 }
   0xf   :  { %256 = vmatpush1.bf16.msra.mxu0 %v1477_v8 }
  0x10   :  { %257 = vmatprep.subr.bf16.mxu0 %v1478_v9 }
  0x13   :  { %258 = vmatpush1.bf16.msra.mxu0 %v1480_v10 }
  0x14   :  { %259 = vmatprep.subr.bf16.mxu0 %v1481_v11 }
  0x17   :  { %260 = vmatpush1.bf16.msra.mxu0 %v1483_v12 }
  0x18   :  { %261 = vmatprep.subr.bf16.mxu0 %v1484_v13 }
  0x1b   :  { %262 = vmatpush1.bf16.msra.mxu0 %v1486_v14 }
  0x1c   :  { %263 = vmatprep.subr.bf16.mxu0 %v1487_v15 }
  0x1f   :  { %264 = vmatpush1.bf16.msra.mxu0 %v1489_v16 }
  0x22   :  { %282 = vmatmul.mubr.bf16.vlgmr.msra.gmra.mrb[0].mxu0 %v1490_v17 }
  0x23   :  { %291 = vmatprep.mubr.bf16.mxu0 %v1550_v2 }
  0x24   :  { %11 = vsyncpa [#allocation3], 0  ;;  %v1491_v18 = vld [vmem:[%s2653_s0 + $0x8] sm:$0xff]   ;;  %v1492_v19 = vld [vmem:[%s2653_s0 + $0x10] sm:$0xff]  }
  0x25   :  { %v1493_v20 = vld [vmem:[%s2653_s0 + $0x18] sm:$0xff]   ;;  %v1494_v21 = vld [vmem:[%s2653_s0 + $0x20] sm:$0xff]   ;;  %v1495_v22 = vld [vmem:[%s2653_s0 + $0x28] sm:$0xff]  }
  0x26   :  { %v1496_v23 = vld [vmem:[%s2653_s0 + $0x30] sm:$0xff]   ;;  %v1497_v24 = vld [vmem:[%s2653_s0 + $0x38] sm:$0xff]   ;;  %v1498_v25 = vld [vmem:[%s2653_s0 + $0x40] sm:$0xff]  }
  0x27   :  { %v1499_v26 = vld [vmem:[%s2653_s0 + $0x48] sm:$0xff]   ;;  %v1500_v27 = vld [vmem:[%s2653_s0 + $0x50] sm:$0xff]   ;;  %v1501_v28 = vld [vmem:[%s2653_s0 + $0x58] sm:$0xff]  }
  0x28   :  { %v1502_v29 = vld [vmem:[%s2653_s0 + $0x60] sm:$0xff]   ;;  %v1503_v30 = vld [vmem:[%s2653_s0 + $0x68] sm:$0xff]   ;;  %v1504_v31 = vld [vmem:[%s2653_s0 + $0x70] sm:$0xff]  }
  0x29   :  { %v1505_v32 = vld [vmem:[%s2653_s0 + $0x78] sm:$0xff]  }
  0x2a   :  { %292 = vmatmul.mubr.bf16.gmra.mrb[4].mxu0 %v1491_v18 }
  0x2b   :  { %301 = vmatprep.mubr.bf16.mxu0 %v1550_v2 }
  0x32   :  { %302 = vmatmul.mubr.bf16.gmra.mrb[8].mxu0 %v1492_v19 }
  0x33   :  { %311 = vmatprep.mubr.bf16.mxu0 %v1550_v2 }
  0x3a   :  { %312 = vmatmul.mubr.bf16.gmra.mrb[12].mxu0 %v1493_v20 }
  0x3b   :  { %321 = vmatprep.mubr.bf16.mxu0 %v1550_v2 }
  0x42   :  { %322 = vmatmul.mubr.bf16.gmra.mrb[16].mxu0 %v1494_v21 }
  0x43   :  { %331 = vmatprep.mubr.bf16.mxu0 %v1550_v2 }
  0x4a   :  { %332 = vmatmul.mubr.bf16.gmra.mrb[20].mxu0 %v1495_v22 }
  0x4b   :  { %341 = vmatprep.mubr.bf16.mxu0 %v1550_v2 }
  0x52   :  { %342 = vmatmul.mubr.bf16.gmra.mrb[24].mxu0 %v1496_v23 }
  0x53   :  { %351 = vmatprep.mubr.bf16.mxu0 %v1550_v2 }
  0x5a   :  { %352 = vmatmul.mubr.bf16.gmra.mrb[28].mxu0 %v1497_v24 }
  0x5b   :  { %361 = vmatprep.mubr.bf16.mxu0 %v1550_v2 }
  0x62   :  { %362 = vmatmul.mubr.bf16.gmra.mrb[32].mxu0 %v1498_v25 }
  0x63   :  { %371 = vmatprep.mubr.bf16.mxu0 %v1550_v2 }
  0x6a   :  { %372 = vmatmul.mubr.bf16.gmra.mrb[36].mxu0 %v1499_v26 }
  0x6b   :  { %381 = vmatprep.mubr.bf16.mxu0 %v1550_v2 }
  0x72   :  { %382 = vmatmul.mubr.bf16.gmra.mrb[40].mxu0 %v1500_v27 }
  0x73   :  { %391 = vmatprep.mubr.bf16.mxu0 %v1550_v2 }
  0x7a   :  { %392 = vmatmul.mubr.bf16.gmra.mrb[44].mxu0 %v1501_v28 }
  0x7b   :  { %401 = vmatprep.mubr.bf16.mxu0 %v1550_v2 }
  0x82   :  { %402 = vmatmul.mubr.bf16.gmra.mrb[48].mxu0 %v1502_v29 }
  0x83   :  { %411 = vmatprep.mubr.bf16.mxu0 %v1550_v2 }
  0x8a   :  { %412 = vmatmul.mubr.bf16.gmra.mrb[52].mxu0 %v1503_v30 }
  0x8b   :  { %421 = vmatprep.mubr.bf16.mxu0 %v1550_v2 }
  0x92   :  { %422 = vmatmul.mubr.bf16.gmra.mrb[56].mxu0 %v1504_v31 }
  0x93   :  { %431 = vmatprep.mubr.bf16.mxu0 %v1550_v2 }
  0x9a   :  { %432 = vmatmul.mubr.bf16.gmra.mrb[60].mxu0 %v1505_v32 }
  0xf5   :  { %v1702_v33 = vpop.f32.mrb[0].mxu0 }
  0xf6   :  { %v1704_v34 = vpop.f32.mrb[1].mxu0  ;;  %v518_v36 = vmul.f32 %v1702_v33, %v1702_v33 }
  0xf7   :  { %v1706_v35 = vpop.f32.mrb[2].mxu0  ;;  %v519_v40 = vmul.f32 %v1704_v34, %v1704_v34 }
  0xf8   :  { %v442_v37 = vadd.f32 %v1706_v35, %v1702_v33  ;;  %v520_v38 = vmul.f32 %v1706_v35, %v1706_v35  ;;  %v1714_v39 = vpop.f32.mrb[3].mxu0 }
  0xf9   :  { %v479_v41 = vadd.f32 %v1714_v39, %v1704_v34  ;;  %v521_v42 = vmul.f32 %v1714_v39, %v1714_v39 }
  0xfa   :  { %v582_v43 = vadd.f32 %v520_v38, %v518_v36 }
  0xfb   :  { %v619_v44 = vadd.f32 %v521_v42, %v519_v40 }
  0xfd   :  { %v1722_v45 = vpop.f32.mrb[4].mxu0 }
  0xfe   :  { %v443_v46 = vadd.f32 %v442_v37, %v1722_v45  ;;  %v522_v47 = vmul.f32 %v1722_v45, %v1722_v45  ;;  %v1727_v48 = vpop.f32.mrb[5].mxu0 }
  0xff   :  { %v480_v49 = vadd.f32 %v479_v41, %v1727_v48  ;;  %v523_v50 = vmul.f32 %v1727_v48, %v1727_v48  ;;  %v1732_v51 = vpop.f32.mrb[6].mxu0 }
 0x100   :  { %v583_v52 = vadd.f32 %v582_v43, %v522_v47  ;;  %v444_v53 = vadd.f32 %v443_v46, %v1732_v51  ;;  %v524_v54 = vmul.f32 %v1732_v51, %v1732_v51  ;;  %v1737_v55 = vpop.f32.mrb[7].mxu0 }
 0x101   :  { %v620_v56 = vadd.f32 %v619_v44, %v523_v50  ;;  %v481_v57 = vadd.f32 %v480_v49, %v1737_v55  ;;  %v525_v58 = vmul.f32 %v1737_v55, %v1737_v55 }
 0x102   :  { %v584_v59 = vadd.f32 %v583_v52, %v524_v54 }
 0x103   :  { %v621_v60 = vadd.f32 %v620_v56, %v525_v58 }
 0x105   :  { %v1742_v61 = vpop.f32.mrb[8].mxu0 }
 0x106   :  { %v445_v62 = vadd.f32 %v444_v53, %v1742_v61  ;;  %v526_v63 = vmul.f32 %v1742_v61, %v1742_v61  ;;  %v1747_v0 = vpop.f32.mrb[9].mxu0 }
 0x107   :  { %v482_v1 = vadd.f32 %v481_v57, %v1747_v0  ;;  %v527_v2 = vmul.f32 %v1747_v0, %v1747_v0  ;;  %v1752_v3 = vpop.f32.mrb[10].mxu0 }
 0x108   :  { %v585_v4 = vadd.f32 %v584_v59, %v526_v63  ;;  %v446_v5 = vadd.f32 %v445_v62, %v1752_v3  ;;  %v528_v6 = vmul.f32 %v1752_v3, %v1752_v3  ;;  %v1757_v7 = vpop.f32.mrb[11].mxu0 }
 0x109   :  { %v622_v8 = vadd.f32 %v621_v60, %v527_v2  ;;  %v483_v9 = vadd.f32 %v482_v1, %v1757_v7  ;;  %v529_v10 = vmul.f32 %v1757_v7, %v1757_v7 }
 0x10a   :  { %v586_v11 = vadd.f32 %v585_v4, %v528_v6 }
 0x10b   :  { %v623_v12 = vadd.f32 %v622_v8, %v529_v10 }
 0x10d   :  { %v1762_v13 = vpop.f32.mrb[12].mxu0 }
 0x10e   :  { %v447_v14 = vadd.f32 %v446_v5, %v1762_v13  ;;  %v530_v15 = vmul.f32 %v1762_v13, %v1762_v13  ;;  %v1767_v16 = vpop.f32.mrb[13].mxu0 }
 0x10f   :  { %v484_v17 = vadd.f32 %v483_v9, %v1767_v16  ;;  %v531_v18 = vmul.f32 %v1767_v16, %v1767_v16  ;;  %v1772_v19 = vpop.f32.mrb[14].mxu0  ;;  %v1506_v9 = vld [vmem:[%s2657_s4 + $0x40] sm:$0xff]  }
 0x110   :  { %v587_v20 = vadd.f32 %v586_v11, %v530_v15  ;;  %v448_v21 = vadd.f32 %v447_v14, %v1772_v19  ;;  %v532_v22 = vmul.f32 %v1772_v19, %v1772_v19  ;;  %v1777_v23 = vpop.f32.mrb[15].mxu0  ;;  %v1507_v11 = vld [vmem:[%s2657_s4] sm:$0xff]   ;;  %1349 = vmatprep.subr.bf16.mxu1 %v1506_v9 }
 0x111   :  { %v624_v24 = vadd.f32 %v623_v12, %v531_v18  ;;  %v485_v25 = vadd.f32 %v484_v17, %v1777_v23  ;;  %v533_v26 = vmul.f32 %v1777_v23, %v1777_v23  ;;  %1350 = vmatpush3.bf16.msra.mxu1 %v1507_v11  ;;  %v1514_v9 = vld [vmem:[%s2657_s4 + $0x60] sm:$0xff]  }
 0x112   :  { %v588_v27 = vadd.f32 %v587_v20, %v532_v22 }
 0x113   :  { %v625_v28 = vadd.f32 %v624_v24, %v533_v26  ;;  %v1508_v26 = vld [vmem:[%s2657_s4 + $0x48] sm:$0xff]  }
 0x114   :  { %1351 = vmatprep.subr.bf16.mxu1 %v1508_v26 }
 0x115   :  { %v1782_v29 = vpop.f32.mrb[16].mxu0 }
 0x116   :  { %v449_v30 = vadd.f32 %v448_v21, %v1782_v29  ;;  %v534_v31 = vmul.f32 %v1782_v29, %v1782_v29  ;;  %v1787_v32 = vpop.f32.mrb[17].mxu0 }
 0x117   :  { %v486_v36 = vadd.f32 %v485_v25, %v1787_v32  ;;  %v535_v37 = vmul.f32 %v1787_v32, %v1787_v32  ;;  %v1792_v38 = vpop.f32.mrb[18].mxu0 }
 0x118   :  { %v589_v40 = vadd.f32 %v588_v27, %v534_v31  ;;  %v450_v41 = vadd.f32 %v449_v30, %v1792_v38  ;;  %v536_v42 = vmul.f32 %v1792_v38, %v1792_v38  ;;  %v1797_v43 = vpop.f32.mrb[19].mxu0  ;;  %v1509_v31 = vld [vmem:[%s2657_s4 + $0x8] sm:$0xff]  }
 0x119   :  { %v626_v44 = vadd.f32 %v625_v28, %v535_v37  ;;  %v487_v46 = vadd.f32 %v486_v36, %v1797_v43  ;;  %v537_v47 = vmul.f32 %v1797_v43, %v1797_v43  ;;  %1352 = vmatpush3.bf16.msra.mxu1 %v1509_v31  ;;  %v1516_v31 = vld [vmem:[%s2657_s4 + $0x68] sm:$0xff]  }
 0x11a   :  { %v590_v49 = vadd.f32 %v589_v40, %v536_v42  ;;  %v1510_v40 = vld [vmem:[%s2657_s4 + $0x50] sm:$0xff]  }
 0x11b   :  { %v627_v50 = vadd.f32 %v626_v44, %v537_v47  ;;  %v1511_v42 = vld [vmem:[%s2657_s4 + $0x10] sm:$0xff]   ;;  %1353 = vmatprep.subr.bf16.mxu1 %v1510_v40 }
 0x11d   :  { %v1802_v52 = vpop.f32.mrb[20].mxu0  ;;  %1354 = vmatpush3.bf16.msra.mxu1 %v1511_v42  ;;  %v1517_v42 = vld [vmem:[%s2657_s4 + $0x28] sm:$0xff]  }
 0x11e   :  { %v451_v53 = vadd.f32 %v450_v41, %v1802_v52  ;;  %v538_v54 = vmul.f32 %v1802_v52, %v1802_v52  ;;  %v1807_v56 = vpop.f32.mrb[21].mxu0 }
 0x11f   :  { %v488_v57 = vadd.f32 %v487_v46, %v1807_v56  ;;  %v539_v58 = vmul.f32 %v1807_v56, %v1807_v56  ;;  %v1812_v59 = vpop.f32.mrb[22].mxu0 }
 0x120   :  { %v591_v60 = vadd.f32 %v590_v49, %v538_v54  ;;  %v452_v62 = vadd.f32 %v451_v53, %v1812_v59  ;;  %v540_v63 = vmul.f32 %v1812_v59, %v1812_v59  ;;  %v1817_v1 = vpop.f32.mrb[23].mxu0 }
 0x121   :  { %v628_v2 = vadd.f32 %v627_v50, %v539_v58  ;;  %v489_v4 = vadd.f32 %v488_v57, %v1817_v1  ;;  %v541_v5 = vmul.f32 %v1817_v1, %v1817_v1 }
 0x122   :  { %v592_v6 = vadd.f32 %v591_v60, %v540_v63 }
 0x123   :  { %v629_v8 = vadd.f32 %v628_v2, %v541_v5  ;;  %v1513_v5 = vld [vmem:[%s2657_s4 + $0x18] sm:$0xff]  }
 0x125   :  { %v1825_v10 = vpop.f32.mrb[24].mxu0 }
 0x126   :  { %v453_v12 = vadd.f32 %v452_v62, %v1825_v10  ;;  %v542_v14 = vmul.f32 %v1825_v10, %v1825_v10  ;;  %v1833_v15 = vpop.f32.mrb[25].mxu0  ;;  %v1512_v62 = vld [vmem:[%s2657_s4 + $0x58] sm:$0xff]  }
 0x127   :  { %v490_v17 = vadd.f32 %v489_v4, %v1833_v15  ;;  %v543_v18 = vmul.f32 %v1833_v15, %v1833_v15  ;;  %v1838_v20 = vpop.f32.mrb[26].mxu0  ;;  %1355 = vmatprep.subr.bf16.mxu1 %v1512_v62 }
 0x128   :  { %v593_v21 = vadd.f32 %v592_v6, %v542_v14  ;;  %v454_v22 = vadd.f32 %v453_v12, %v1838_v20  ;;  %v544_v24 = vmul.f32 %v1838_v20, %v1838_v20  ;;  %v1843_v25 = vpop.f32.mrb[27].mxu0  ;;  %1356 = vmatpush3.bf16.msra.mxu1 %v1513_v5  ;;  %v1515_v12 = vld [vmem:[%s2657_s4 + $0x20] sm:$0xff]   ;;  %v1520_v5 = vld [vmem:[%s2657_s4 + $0x78] sm:$0xff]  }
 0x129   :  { %v630_v27 = vadd.f32 %v629_v8, %v543_v18  ;;  %v491_v28 = vadd.f32 %v490_v17, %v1843_v25  ;;  %v545_v30 = vmul.f32 %v1843_v25, %v1843_v25  ;;  %1357 = vmatprep.subr.bf16.mxu1 %v1514_v9 }
 0x12a   :  { %v594_v36 = vadd.f32 %v593_v21, %v544_v24 }
 0x12b   :  { %v631_v37 = vadd.f32 %v630_v27, %v545_v30 }
 0x12c   :  { %1358 = vmatpush3.bf16.msra.mxu1 %v1515_v12 }
 0x12d   :  { %v1857_v41 = vpop.f32.mrb[28].mxu0  ;;  %1359 = vmatprep.subr.bf16.mxu1 %v1516_v31 }
 0x12e   :  { %v455_v44 = vadd.f32 %v454_v22, %v1857_v41  ;;  %v546_v46 = vmul.f32 %v1857_v41, %v1857_v41  ;;  %v1865_v47 = vpop.f32.mrb[29].mxu0 }
 0x12f   :  { %v492_v49 = vadd.f32 %v491_v28, %v1865_v47  ;;  %v547_v50 = vmul.f32 %v1865_v47, %v1865_v47  ;;  %v1870_v53 = vpop.f32.mrb[30].mxu0 }
 0x130   :  { %v595_v54 = vadd.f32 %v594_v36, %v546_v46  ;;  %v456_v57 = vadd.f32 %v455_v44, %v1870_v53  ;;  %v548_v58 = vmul.f32 %v1870_v53, %v1870_v53  ;;  %v1875_v60 = vpop.f32.mrb[31].mxu0  ;;  %1360 = vmatpush3.bf16.msra.mxu1 %v1517_v42 }
 0x131   :  { %v632_v63 = vadd.f32 %v631_v37, %v547_v50  ;;  %v493_v2 = vadd.f32 %v492_v49, %v1875_v60  ;;  %v549_v4 = vmul.f32 %v1875_v60, %v1875_v60  ;;  %v1518_v49 = vld [vmem:[%s2657_s4 + $0x70] sm:$0xff]  }
 0x132   :  { %v596_v6 = vadd.f32 %v595_v54, %v548_v58  ;;  %v1519_v54 = vld [vmem:[%s2657_s4 + $0x30] sm:$0xff]   ;;  %1361 = vmatprep.subr.bf16.mxu1 %v1518_v49 }
 0x133   :  { %v633_v8 = vadd.f32 %v632_v63, %v549_v4 }
 0x134   :  { %1362 = vmatpush3.bf16.msra.mxu1 %v1519_v54 }
 0x135   :  { %v1889_v11 = vpop.f32.mrb[32].mxu0  ;;  %1363 = vmatprep.subr.bf16.mxu1 %v1520_v5 }
 0x136   :  { %v457_v14 = vadd.f32 %v456_v57, %v1889_v11  ;;  %v550_v17 = vmul.f32 %v1889_v11, %v1889_v11  ;;  %v1897_v18 = vpop.f32.mrb[33].mxu0 }
 0x137   :  { %v494_v21 = vadd.f32 %v493_v2, %v1897_v18  ;;  %v551_v22 = vmul.f32 %v1897_v18, %v1897_v18  ;;  %v1902_v24 = vpop.f32.mrb[34].mxu0 }
 0x138   :  { %v597_v26 = vadd.f32 %v596_v6, %v550_v17  ;;  %v458_v27 = vadd.f32 %v457_v14, %v1902_v24  ;;  %v552_v28 = vmul.f32 %v1902_v24, %v1902_v24  ;;  %v1907_v30 = vpop.f32.mrb[35].mxu0  ;;  %v1521_v6 = vld [vmem:[%s2657_s4 + $0x38] sm:$0xff]  }
 0x139   :  { %v634_v36 = vadd.f32 %v633_v8, %v551_v22  ;;  %v495_v37 = vadd.f32 %v494_v21, %v1907_v30  ;;  %v553_v40 = vmul.f32 %v1907_v30, %v1907_v30  ;;  %1364 = vmatpush3.bf16.msra.mxu1 %v1521_v6 }
 0x13a   :  { %v598_v44 = vadd.f32 %v597_v26, %v552_v28 }
 0x13b   :  { %v635_v46 = vadd.f32 %v634_v36, %v553_v40 }
 0x13d   :  { %v1921_v50 = vpop.f32.mrb[36].mxu0 }
 0x13e   :  { %2688 = vst [vmem:[#allocation5_spill] sm:$0xff] %v1921_v50  ;;  %v459_v57 = vadd.f32 %v458_v27, %v1921_v50  ;;  %v554_v58 = vmul.f32 %v1921_v50, %v1921_v50  ;;  %v1929_v62 = vpop.f32.mrb[37].mxu0 }
 0x13f   :  { %2689 = vst [vmem:[#allocation6_spill] sm:$0xff] %v1929_v62  ;;  %v496_v63 = vadd.f32 %v495_v37, %v1929_v62  ;;  %v555_v2 = vmul.f32 %v1929_v62, %v1929_v62  ;;  %v1934_v4 = vpop.f32.mrb[38].mxu0 }
 0x140   :  { %2690 = vst [vmem:[#allocation7_spill] sm:$0xff] %v1934_v4  ;;  %v599_v8 = vadd.f32 %v598_v44, %v554_v58  ;;  %v460_v9 = vadd.f32 %v459_v57, %v1934_v4  ;;  %v556_v12 = vmul.f32 %v1934_v4, %v1934_v4  ;;  %v1945_v14 = vpop.f32.mrb[39].mxu0 }
 0x141   :  { %2691 = vst [vmem:[#allocation8_spill] sm:$0xff] %v1945_v14  ;;  %v636_v17 = vadd.f32 %v635_v46, %v555_v2  ;;  %v497_v21 = vadd.f32 %v496_v63, %v1945_v14  ;;  %v557_v22 = vmul.f32 %v1945_v14, %v1945_v14 }
 0x142   :  { %v600_v26 = vadd.f32 %v599_v8, %v556_v12 }
 0x143   :  { %v637_v27 = vadd.f32 %v636_v17, %v557_v22 }
 0x145   :  { %v1950_v28 = vpop.f32.mrb[40].mxu0 }
 0x146   :  { %2692 = vst [vmem:[#allocation9_spill] sm:$0xff] %v1950_v28  ;;  %v461_v31 = vadd.f32 %v460_v9, %v1950_v28  ;;  %v558_v36 = vmul.f32 %v1950_v28, %v1950_v28  ;;  %v1955_v37 = vpop.f32.mrb[41].mxu0 }
 0x147   :  { %2693 = vst [vmem:[#allocation10_spill] sm:$0xff] %v1955_v37  ;;  %v498_v40 = vadd.f32 %v497_v21, %v1955_v37  ;;  %v559_v42 = vmul.f32 %v1955_v37, %v1955_v37  ;;  %v1960_v44 = vpop.f32.mrb[42].mxu0 }
 0x148   :  { %2694 = vst [vmem:[#allocation11_spill] sm:$0xff] %v1960_v44  ;;  %v601_v46 = vadd.f32 %v600_v26, %v558_v36  ;;  %v462_v49 = vadd.f32 %v461_v31, %v1960_v44  ;;  %v560_v54 = vmul.f32 %v1960_v44, %v1960_v44  ;;  %v1965_v57 = vpop.f32.mrb[43].mxu0 }
 0x149   :  { %2695 = vst [vmem:[#allocation12_spill] sm:$0xff] %v1965_v57  ;;  %v638_v58 = vadd.f32 %v637_v27, %v559_v42  ;;  %v499_v63 = vadd.f32 %v498_v40, %v1965_v57  ;;  %v561_v2 = vmul.f32 %v1965_v57, %v1965_v57 }
 0x14a   :  { %v602_v5 = vadd.f32 %v601_v46, %v560_v54 }
 0x14b   :  { %v639_v6 = vadd.f32 %v638_v58, %v561_v2 }
 0x14d   :  { %v1970_v8 = vpop.f32.mrb[44].mxu0 }
 0x14e   :  { %2696 = vst [vmem:[#allocation13_spill] sm:$0xff] %v1970_v8  ;;  %v463_v9 = vadd.f32 %v462_v49, %v1970_v8  ;;  %v562_v12 = vmul.f32 %v1970_v8, %v1970_v8  ;;  %v1975_v17 = vpop.f32.mrb[45].mxu0 }
 0x14f   :  { %2697 = vst [vmem:[#allocation14_spill] sm:$0xff] %v1975_v17  ;;  %v500_v21 = vadd.f32 %v499_v63, %v1975_v17  ;;  %v563_v22 = vmul.f32 %v1975_v17, %v1975_v17  ;;  %v1980_v26 = vpop.f32.mrb[46].mxu0 }
 0x150   :  { %2698 = vst [vmem:[#allocation15_spill] sm:$0xff] %v1980_v26  ;;  %v603_v27 = vadd.f32 %v602_v5, %v562_v12  ;;  %v464_v31 = vadd.f32 %v463_v9, %v1980_v26  ;;  %v564_v36 = vmul.f32 %v1980_v26, %v1980_v26  ;;  %v1985_v40 = vpop.f32.mrb[47].mxu0 }
 0x151   :  { %2699 = vst [vmem:[#allocation16_spill] sm:$0xff] %v1985_v40  ;;  %v640_v42 = vadd.f32 %v639_v6, %v563_v22  ;;  %v501_v46 = vadd.f32 %v500_v21, %v1985_v40  ;;  %v565_v49 = vmul.f32 %v1985_v40, %v1985_v40 }
 0x152   :  { %v604_v54 = vadd.f32 %v603_v27, %v564_v36 }
 0x153   :  { %v641_v58 = vadd.f32 %v640_v42, %v565_v49 }
 0x155   :  { %v1990_v63 = vpop.f32.mrb[48].mxu0 }
 0x156   :  { %2700 = vst [vmem:[#allocation17_spill] sm:$0xff] %v1990_v63  ;;  %v465_v2 = vadd.f32 %v464_v31, %v1990_v63  ;;  %v566_v5 = vmul.f32 %v1990_v63, %v1990_v63  ;;  %v1995_v9 = vpop.f32.mrb[49].mxu0 }
 0x157   :  { %2701 = vst [vmem:[#allocation18_spill] sm:$0xff] %v1995_v9  ;;  %v502_v12 = vadd.f32 %v501_v46, %v1995_v9  ;;  %v567_v6 = vmul.f32 %v1995_v9, %v1995_v9  ;;  %v2000_v21 = vpop.f32.mrb[50].mxu0 }
 0x158   :  { %2702 = vst [vmem:[#allocation19_spill] sm:$0xff] %v2000_v21  ;;  %v605_v22 = vadd.f32 %v604_v54, %v566_v5  ;;  %v466_v27 = vadd.f32 %v465_v2, %v2000_v21  ;;  %v568_v36 = vmul.f32 %v2000_v21, %v2000_v21  ;;  %v2005_v42 = vpop.f32.mrb[51].mxu0 }
 0x159   :  { %2703 = vst [vmem:[#allocation20_spill] sm:$0xff] %v2005_v42  ;;  %v642_v31 = vadd.f32 %v641_v58, %v567_v6  ;;  %v503_v49 = vadd.f32 %v502_v12, %v2005_v42  ;;  %v569_v63 = vmul.f32 %v2005_v42, %v2005_v42 }
 0x15a   :  { %v606_v46 = vadd.f32 %v605_v22, %v568_v36 }
 0x15b   :  { %v643_v40 = vadd.f32 %v642_v31, %v569_v63 }
 0x15d   :  { %v2010_v26 = vpop.f32.mrb[52].mxu0 }
 0x15e   :  { %2704 = vst [vmem:[#allocation21_spill] sm:$0xff] %v2010_v26  ;;  %v467_v9 = vadd.f32 %v466_v27, %v2010_v26  ;;  %v570_v54 = vmul.f32 %v2010_v26, %v2010_v26  ;;  %v2015_v2 = vpop.f32.mrb[53].mxu0 }
 0x15f   :  { %2705 = vst [vmem:[#allocation22_spill] sm:$0xff] %v2015_v2  ;;  %v504_v5 = vadd.f32 %v503_v49, %v2015_v2  ;;  %v571_v58 = vmul.f32 %v2015_v2, %v2015_v2  ;;  %v2020_v12 = vpop.f32.mrb[54].mxu0 }
 0x160   :  { %2706 = vst [vmem:[#allocation23_spill] sm:$0xff] %v2020_v12  ;;  %v607_v6 = vadd.f32 %v606_v46, %v570_v54  ;;  %v468_v22 = vadd.f32 %v467_v9, %v2020_v12  ;;  %v572_v63 = vmul.f32 %v2020_v12, %v2020_v12  ;;  %v2025_v36 = vpop.f32.mrb[55].mxu0 }
 0x161   :  { %2707 = vst [vmem:[#allocation24_spill] sm:$0xff] %v2025_v36  ;;  %v644_v27 = vadd.f32 %v643_v40, %v571_v58  ;;  %v505_v31 = vadd.f32 %v504_v5, %v2025_v36  ;;  %v573_v26 = vmul.f32 %v2025_v36, %v2025_v36 }
 0x162   :  { %v608_v49 = vadd.f32 %v607_v6, %v572_v63 }
 0x163   :  { %v645_v42 = vadd.f32 %v644_v27, %v573_v26 }
 0x165   :  { %v2030_v21 = vpop.f32.mrb[56].mxu0 }
 0x166   :  { %2708 = vst [vmem:[#allocation25_spill] sm:$0xff] %v2030_v21  ;;  %v469_v2 = vadd.f32 %v468_v22, %v2030_v21  ;;  %v574_v9 = vmul.f32 %v2030_v21, %v2030_v21  ;;  %v2035_v46 = vpop.f32.mrb[57].mxu0 }
 0x167   :  { %2709 = vst [vmem:[#allocation26_spill] sm:$0xff] %v2035_v46  ;;  %v506_v54 = vadd.f32 %v505_v31, %v2035_v46  ;;  %v575_v40 = vmul.f32 %v2035_v46, %v2035_v46  ;;  %v2040_v5 = vpop.f32.mrb[58].mxu0 }
 0x168   :  { %2710 = vst [vmem:[#allocation27_spill] sm:$0xff] %v2040_v5  ;;  %v609_v58 = vadd.f32 %v608_v49, %v574_v9  ;;  %v470_v6 = vadd.f32 %v469_v2, %v2040_v5  ;;  %v576_v26 = vmul.f32 %v2040_v5, %v2040_v5  ;;  %v2045_v63 = vpop.f32.mrb[59].mxu0 }
 0x169   :  { %2711 = vst [vmem:[#allocation28_spill] sm:$0xff] %v2045_v63  ;;  %v646_v22 = vadd.f32 %v645_v42, %v575_v40  ;;  %v507_v27 = vadd.f32 %v506_v54, %v2045_v63  ;;  %v577_v21 = vmul.f32 %v2045_v63, %v2045_v63 }
 0x16a   :  { %v610_v31 = vadd.f32 %v609_v58, %v576_v26 }
 0x16b   :  { %v647_v36 = vadd.f32 %v646_v22, %v577_v21 }
 0x16d   :  { %v2050_v12 = vpop.f32.mrb[60].mxu0 }
 0x16e   :  { %2712 = vst [vmem:[#allocation29_spill] sm:$0xff] %v2050_v12  ;;  %v471_v46 = vadd.f32 %v470_v6, %v2050_v12  ;;  %v578_v2 = vmul.f32 %v2050_v12, %v2050_v12  ;;  %v2055_v49 = vpop.f32.mrb[61].mxu0 }
 0x16f   :  { %2713 = vst [vmem:[#allocation30_spill] sm:$0xff] %v2055_v49  ;;  %v508_v9 = vadd.f32 %v507_v27, %v2055_v49  ;;  %v579_v42 = vmul.f32 %v2055_v49, %v2055_v49  ;;  %v2060_v54 = vpop.f32.mrb[62].mxu0 }
 0x170   :  { %2714 = vst [vmem:[#allocation31_spill] sm:$0xff] %v2060_v54  ;;  %v611_v40 = vadd.f32 %v610_v31, %v578_v2  ;;  %v472_v58 = vadd.f32 %v471_v46, %v2060_v54  ;;  %v580_v21 = vmul.f32 %v2060_v54, %v2060_v54  ;;  %v2065_v26 = vpop.f32.mrb[63].mxu0 }
 0x171   :  { %v648_v6 = vadd.f32 %v647_v36, %v579_v42  ;;  %v509_v22 = vadd.f32 %v508_v9, %v2065_v26  ;;  %v581_v12 = vmul.f32 %v2065_v26, %v2065_v26 }
 0x172   :  { %v473_v27 = vrot.slane %v472_v58, 4  ;;  %v612_v63 = vadd.f32 %v611_v40, %v580_v21 }
 0x173   :  { %v510_v5 = vrot.slane %v509_v22, 4  ;;  %v649_v49 = vadd.f32 %v648_v6, %v581_v12 }
 0x174   :  { %v474_v17 = vadd.f32 %v473_v27, %v472_v58  ;;  %v613_v8 = vrot.slane %v612_v63, 4 }
 0x175   :  { %v511_v31 = vadd.f32 %v510_v5, %v509_v22  ;;  %v650_v2 = vrot.slane %v649_v49, 4 }
 0x176   :  { %v475_v46 = vrot.slane %v474_v17, 2  ;;  %v614_v57 = vadd.f32 %v613_v8, %v612_v63 }
 0x177   :  { %v512_v44 = vrot.slane %v511_v31, 2  ;;  %v651_v54 = vadd.f32 %v650_v2, %v649_v49 }
 0x178   :  { %v476_v37 = vadd.f32 %v475_v46, %v474_v17  ;;  %v615_v28 = vrot.slane %v614_v57, 2 }
 0x179   :  { %v513_v36 = vadd.f32 %v512_v44, %v511_v31  ;;  %v652_v42 = vrot.slane %v651_v54, 2 }
 0x17a   :  { %v477_v9 = vrot.slane %v476_v37, 1  ;;  %v616_v14 = vadd.f32 %v615_v28, %v614_v57 }
 0x17b   :  { %v514_v4 = vrot.slane %v513_v36, 1  ;;  %v653_v62 = vadd.f32 %v652_v42, %v651_v54 }
 0x17c   :  { %v478_v50 = vadd.f32 %v477_v9, %v476_v37  ;;  %v617_v40 = vrot.slane %v616_v14, 1  ;;  %v1551_v37 = vmov 1966171168  }
 0x17d   :  { %v515_v21 = vadd.f32 %v514_v4, %v513_v36  ;;  %v654_v12 = vrot.slane %v653_v62, 1  ;;  %v673_v57 = vunpack.c.l.s4 %v1551_v37  ;;  %v675_v4 = vlaneseq }
 0x17e   :  { %v516_v58 = vmul.f32 0.00390625, %v478_v50  ;;  %v618_v6 = vadd.f32 %v617_v40, %v616_v14  ;;  %v664_v40 = vld [vmem:[%s2655_s2] sm:$0x3] }
 0x17f   :  { %v517_v5 = vmul.f32 0.00390625, %v515_v21  ;;  %v655_v22 = vadd.f32 %v654_v12, %v653_v62  ;;  %v674_v54 = vunpack.c.0.s8 %v673_v57  ;;  %v676_v50 = vshrl.u32 %v675_v4, 7 }
 0x180   :  { %v656_v27 = vmul.f32 0.00390625, %v618_v6  ;;  %v658_v8 = vmul.f32 %v516_v58, %v516_v58 }
 0x181   :  { %v657_v63 = vmul.f32 0.00390625, %v655_v22  ;;  %v659_v49 = vmul.f32 %v517_v5, %v517_v5  ;;  %v677_v36 = vsub.s32 %v674_v54, %v676_v50  ;;  %v692_v12 = vsub.s32 0, %v676_v50  ;;  %v2722_v54 = vld [vmem:[#allocation5_spill] sm:$0xff] }
 0x182   :  { %v660_v17 = vsub.f32 %v656_v27, %v658_v8  ;;  %v696_v6 = vsub.s32 1, %v676_v50  ;;  %v2724_v50 = vld [vmem:[#allocation6_spill] sm:$0xff] }
 0x183   :  { %v661_v2 = vsub.f32 %v657_v63, %v659_v49 }
 0x184   :  { %v662_v44 = vmax.f32 %v660_v17, 0.0 }
 0x185   :  { %v663_v31 = vmax.f32 %v661_v2, 0.0 }
 0x186   :  { %v665_v46 = vadd.f32 1e-05, %v662_v44 }
 0x187   :  { %v666_v28 = vadd.f32 1e-05, %v663_v31 }
 0x188   :  { %1522 = vrsqrt.f32 %v665_v46 }
 0x189   :  { %1524 = vrsqrt.f32 %v666_v28 }
 0x192   :  { %v1523_v14 = vpop.eup %1522 }
 0x193   :  { %v1525_v62 = vpop.eup %1524 }
 0x194   :  { %v671_v42 = vcombine.low %v1523_v14, %v1525_v62 }
 0x196   :  { %v678_v9 = vrot.slane %v671_v42, %v677_v36 }
 0x198   :  { %v685_v21 = vrot.slane %v678_v9, %v677_v36 }
 0x19a   :  { %v687_v22 = vmul.f32 %v685_v21, %v664_v40  ;;  %v2731_v40 = vld [vmem:[#allocation10_spill] sm:$0xff] }
 0x19c   :  { %v2073_v27 = vrot.slane %v687_v22, %v692_v12  ;;  %v2075_v8 = vrot.slane %v687_v22, %v696_v6  ;;  %v2733_v22 = vld [vmem:[#allocation12_spill] sm:$0xff] }
 0x19e   :  { %v700_v63 = vmul.f32 %v2073_v27, %v516_v58  ;;  %v701_v49 = vmul.f32 %v2075_v8, %v517_v5  ;;  %v784_v17 = vmul.f32 %v2075_v8, %v2065_v26  ;;  %v2083_v2 = vmul.f32 %v2073_v27, %v1702_v33 }
 0x19f   :  { %v2087_v44 = vmul.f32 %v2075_v8, %v1704_v34  ;;  %v2091_v31 = vmul.f32 %v2073_v27, %v1706_v35  ;;  %v2095_v58 = vmul.f32 %v2075_v8, %v1714_v39  ;;  %v2099_v5 = vmul.f32 %v2073_v27, %v1722_v45 }
 0x1a0   :  { %v704_v26 = vcombine.low %v700_v63, %v701_v49  ;;  %v2103_v33 = vmul.f32 %v2075_v8, %v1727_v48  ;;  %v2107_v34 = vmul.f32 %v2073_v27, %v1732_v51  ;;  %v2111_v35 = vmul.f32 %v2075_v8, %v1737_v55  ;;  %v2734_v49 = vld [vmem:[#allocation13_spill] sm:$0xff] }
 0x1a1   :  { %2715 = vst [vmem:[#allocation32_spill] sm:$0xff] %v2087_v44  ;;  %2716 = vst [vmem:[#allocation33_spill] sm:$0xff] %v2095_v58  ;;  %v2115_v39 = vmul.f32 %v2073_v27, %v1742_v61  ;;  %v2119_v45 = vmul.f32 %v2075_v8, %v1747_v0  ;;  %v2123_v48 = vmul.f32 %v2073_v27, %v1752_v3  ;;  %v688_v3 = vld [vmem:[%s2656_s3] sm:$0x3]  ;;  %v2744_v44 = vld [vmem:[#allocation23_spill] sm:$0xff] }
 0x1a2   :  { %v2127_v51 = vmul.f32 %v2075_v8, %v1757_v7  ;;  %v711_v46 = vrot.slane %v704_v26, %v677_v36  ;;  %v2131_v55 = vmul.f32 %v2073_v27, %v1762_v13  ;;  %v2135_v61 = vmul.f32 %v2075_v8, %v1767_v16  ;;  %v2742_v58 = vld [vmem:[#allocation21_spill] sm:$0xff] }
 0x1a3   :  { %v2139_v0 = vmul.f32 %v2073_v27, %v1772_v19  ;;  %v2146_v7 = vmul.f32 %v2075_v8, %v1777_v23  ;;  %v2150_v13 = vmul.f32 %v2073_v27, %v1782_v29  ;;  %v2154_v16 = vmul.f32 %v2075_v8, %v1787_v32 }
 0x1a4   :  { %v2158_v19 = vmul.f32 %v2073_v27, %v1792_v38  ;;  %v718_v28 = vrot.slane %v711_v46, %v677_v36  ;;  %v2162_v37 = vmul.f32 %v2075_v8, %v1797_v43  ;;  %v2166_v23 = vmul.f32 %v2073_v27, %v1802_v52  ;;  %v2726_v36 = vld [vmem:[#allocation7_spill] sm:$0xff] }
 0x1a5   :  { %v2170_v29 = vmul.f32 %v2075_v8, %v1807_v56  ;;  %v2174_v32 = vmul.f32 %v2073_v27, %v1812_v59  ;;  %v2178_v38 = vmul.f32 %v2075_v8, %v1817_v1  ;;  %v2182_v43 = vmul.f32 %v2073_v27, %v1825_v10 }
 0x1a6   :  { %v2186_v52 = vmul.f32 %v2075_v8, %v1833_v15  ;;  %v720_v57 = vsub.f32 %v688_v3, %v718_v28  ;;  %v2190_v56 = vmul.f32 %v2073_v27, %v1838_v20  ;;  %v2194_v59 = vmul.f32 %v2075_v8, %v1843_v25  ;;  %v2736_v28 = vld [vmem:[#allocation15_spill] sm:$0xff] }
 0x1a7   :  { %v2198_v1 = vmul.f32 %v2073_v27, %v1857_v41  ;;  %v2202_v10 = vmul.f32 %v2075_v8, %v1865_v47  ;;  %v2206_v15 = vmul.f32 %v2073_v27, %v1870_v53  ;;  %v2210_v20 = vmul.f32 %v2075_v8, %v1875_v60 }
 0x1a8   :  { %v2214_v25 = vmul.f32 %v2073_v27, %v1889_v11  ;;  %v2216_v4 = vrot.slane %v720_v57, %v692_v12  ;;  %v2218_v41 = vrot.slane %v720_v57, %v696_v6  ;;  %v2222_v47 = vmul.f32 %v2075_v8, %v1897_v18  ;;  %v2732_v12 = vld [vmem:[#allocation11_spill] sm:$0xff] }
 0x1a9   :  { %2717 = vst [vmem:[#allocation34_spill] sm:$0xff] %v2210_v20  ;;  %v2226_v53 = vmul.f32 %v2073_v27, %v1902_v24  ;;  %v2230_v60 = vmul.f32 %v2075_v8, %v1907_v30  ;;  %v2234_v11 = vmul.f32 %v2073_v27, %v2722_v54  ;;  %v2238_v14 = vmul.f32 %v2075_v8, %v2724_v50  ;;  %v2729_v24 = vld [vmem:[#allocation8_spill] sm:$0xff]  ;;  %v2730_v30 = vld [vmem:[#allocation9_spill] sm:$0xff]  ;;  %v2752_v20 = vld [vmem:[#allocation31_spill] sm:$0xff] }
 0x1aa   :  { %2718 = vst [vmem:[#allocation35_spill] sm:$0xff] %v2214_v25  ;;  %2719 = vst [vmem:[#allocation36_spill] sm:$0xff] %v2222_v47  ;;  %v2242_v18 = vmul.f32 %v2073_v27, %v2726_v36  ;;  %v2245_v62 = vadd.f32 %v2218_v41, %v784_v17  ;;  %v760_v42 = vmul.f32 %v2075_v8, %v2729_v24  ;;  %v2735_v17 = vld [vmem:[#allocation14_spill] sm:$0xff]  ;;  %v2737_v54 = vld [vmem:[#allocation16_spill] sm:$0xff] }
 0x1ab   :  { %2720 = vst [vmem:[#allocation37_spill] sm:$0xff] %v2226_v53  ;;  %2721 = vst [vmem:[#allocation38_spill] sm:$0xff] %v2230_v60  ;;  %v761_v9 = vmul.f32 %v2073_v27, %v2730_v30  ;;  %v762_v21 = vmul.f32 %v2075_v8, %v2731_v40  ;;  %v763_v6 = vmul.f32 %v2073_v27, %v2732_v12  ;;  %v2738_v36 = vld [vmem:[#allocation17_spill] sm:$0xff]  ;;  %v2739_v30 = vld [vmem:[#allocation18_spill] sm:$0xff] }
 0x1ac   :  { %2723 = vst [vmem:[#allocation5_spill] sm:$0xff] %v2234_v11  ;;  %2725 = vst [vmem:[#allocation6_spill] sm:$0xff] %v2238_v14  ;;  %v764_v63 = vmul.f32 %v2075_v8, %v2733_v22  ;;  %v765_v26 = vmul.f32 %v2073_v27, %v2734_v49  ;;  %v766_v46 = vmul.f32 %v2075_v8, %v2735_v17  ;;  %v2740_v12 = vld [vmem:[#allocation19_spill] sm:$0xff]  ;;  %v2741_v49 = vld [vmem:[#allocation20_spill] sm:$0xff] }
 0x1ad   :  { %2727 = vst [vmem:[#allocation7_spill] sm:$0xff] %v2242_v18  ;;  %2728 = vst [vmem:[#allocation39_spill] sm:$0xff] %v2245_v62  ;;  %v767_v57 = vmul.f32 %v2073_v27, %v2736_v28  ;;  %v768_v50 = vmul.f32 %v2075_v8, %v2737_v54  ;;  %v769_v24 = vmul.f32 %v2073_v27, %v2738_v36  ;;  %v2743_v62 = vld [vmem:[#allocation22_spill] sm:$0xff]  ;;  %v2745_v18 = vld [vmem:[#allocation24_spill] sm:$0xff] }
 0x1ae   :  { %v770_v40 = vmul.f32 %v2075_v8, %v2739_v30  ;;  %v771_v22 = vmul.f32 %v2073_v27, %v2740_v12  ;;  %v772_v17 = vmul.f32 %v2075_v8, %v2741_v49  ;;  %v773_v3 = vmul.f32 %v2073_v27, %v2742_v58  ;;  %v2746_v14 = vld [vmem:[#allocation25_spill] sm:$0xff]  ;;  %v2747_v11 = vld [vmem:[#allocation26_spill] sm:$0xff]  ;;  %v2748_v60 = vld [vmem:[#allocation27_spill] sm:$0xff] }
 0x1af   :  { %v774_v28 = vmul.f32 %v2075_v8, %v2743_v62  ;;  %v775_v54 = vmul.f32 %v2073_v27, %v2744_v44  ;;  %v776_v36 = vmul.f32 %v2075_v8, %v2745_v18  ;;  %v777_v30 = vmul.f32 %v2073_v27, %v2746_v14  ;;  %v2749_v53 = vld [vmem:[#allocation28_spill] sm:$0xff]  ;;  %v2750_v47 = vld [vmem:[#allocation29_spill] sm:$0xff]  ;;  %v2751_v25 = vld [vmem:[#allocation30_spill] sm:$0xff] }
 0x1b0   :  { %v778_v12 = vmul.f32 %v2075_v8, %v2747_v11  ;;  %v779_v49 = vmul.f32 %v2073_v27, %v2748_v60  ;;  %v780_v58 = vmul.f32 %v2075_v8, %v2749_v53  ;;  %v781_v62 = vmul.f32 %v2073_v27, %v2750_v47 }
 0x1b1   :  { %v782_v44 = vmul.f32 %v2075_v8, %v2751_v25  ;;  %v783_v18 = vmul.f32 %v2073_v27, %v2752_v20  ;;  %v2298_v14 = vadd.f32 %v2216_v4, %v2083_v2  ;;  %v2302_v11 = vadd.f32 %v2216_v4, %v2091_v31  ;;  %v2757_v20 = vld [vmem:[#allocation35_spill] sm:$0xff]  ;;  %v2759_v25 = vld [vmem:[#allocation36_spill] sm:$0xff] }
 0x1b2   :  { %v2306_v53 = vadd.f32 %v2216_v4, %v2099_v5  ;;  %v2310_v47 = vadd.f32 %v2218_v41, %v2103_v33  ;;  %v2314_v8 = vadd.f32 %v2216_v4, %v2107_v34  ;;  %v2318_v27 = vadd.f32 %v2218_v41, %v2111_v35  ;;  %v2761_v60 = vld [vmem:[#allocation37_spill] sm:$0xff] }
 0x1b3   :  { %v2322_v2 = vadd.f32 %v2216_v4, %v2115_v39  ;;  %v2326_v31 = vadd.f32 %v2218_v41, %v2119_v45  ;;  %v2330_v5 = vadd.f32 %v2216_v4, %v2123_v48  ;;  %v2334_v33 = vadd.f32 %v2218_v41, %v2127_v51 }
 0x1b4   :  { %v2338_v34 = vadd.f32 %v2216_v4, %v2131_v55  ;;  %v2342_v35 = vadd.f32 %v2218_v41, %v2135_v61  ;;  %v2346_v39 = vadd.f32 %v2216_v4, %v2139_v0  ;;  %v2350_v45 = vadd.f32 %v2218_v41, %v2146_v7 }
 0x1b5   :  { %v2354_v48 = vadd.f32 %v2216_v4, %v2150_v13  ;;  %v2358_v51 = vadd.f32 %v2218_v41, %v2154_v16  ;;  %v2362_v55 = vadd.f32 %v2216_v4, %v2158_v19  ;;  %v2366_v61 = vadd.f32 %v2218_v41, %v2162_v37 }
 0x1b6   :  { %v2370_v0 = vadd.f32 %v2216_v4, %v2166_v23  ;;  %v2374_v7 = vadd.f32 %v2218_v41, %v2170_v29  ;;  %v2378_v13 = vadd.f32 %v2216_v4, %v2174_v32  ;;  %v2382_v16 = vadd.f32 %v2218_v41, %v2178_v38 }
 0x1b7   :  { %v2386_v19 = vadd.f32 %v2216_v4, %v2182_v43  ;;  %v2390_v37 = vadd.f32 %v2218_v41, %v2186_v52  ;;  %v2394_v23 = vadd.f32 %v2216_v4, %v2190_v56  ;;  %v2398_v29 = vadd.f32 %v2218_v41, %v2194_v59  ;;  %v2755_v52 = vld [vmem:[#allocation34_spill] sm:$0xff] }
 0x1b8   :  { %v2402_v32 = vadd.f32 %v2216_v4, %v2198_v1  ;;  %v2406_v38 = vadd.f32 %v2218_v41, %v2202_v10  ;;  %v2410_v43 = vadd.f32 %v2216_v4, %v2206_v15  ;;  %v2414_v56 = vadd.f32 %v2218_v41, %v2755_v52 }
 0x1b9   :  { %v2418_v59 = vadd.f32 %v2216_v4, %v2757_v20  ;;  %v2422_v1 = vadd.f32 %v2218_v41, %v2759_v25  ;;  %v2426_v10 = vadd.f32 %v2216_v4, %v2761_v60  ;;  %v2448_v60 = vadd.f32 %v2216_v4, %v761_v9 }
 0x1ba   :  { %2753 = vst [vmem:[#allocation8_spill] sm:$0xff] %v2402_v32  ;;  %2754 = vst [vmem:[#allocation9_spill] sm:$0xff] %v2410_v43  ;;  %v2762_v32 = vld [vmem:[#allocation38_spill] sm:$0xff]  ;;  %v2763_v43 = vld [vmem:[#allocation5_spill] sm:$0xff]  ;;  %v2469_v9 = vadd.f32 %v2218_v41, %v768_v50  ;;  %v2490_v50 = vadd.f32 %v2216_v4, %v775_v54  ;;  %v2511_v54 = vadd.f32 %v2218_v41, %v782_v44  ;;  %v864_v44 = vmax.f32 %v2306_v53, 0.0 }
 0x1bb   :  { %2756 = vst [vmem:[#allocation10_spill] sm:$0xff] %v2414_v56  ;;  %2758 = vst [vmem:[#allocation11_spill] sm:$0xff] %v2418_v59  ;;  %v2430_v15 = vadd.f32 %v2218_v41, %v2762_v32  ;;  %v2434_v52 = vadd.f32 %v2216_v4, %v2763_v43  ;;  %v2765_v56 = vld [vmem:[#allocation6_spill] sm:$0xff]  ;;  %v2766_v59 = vld [vmem:[#allocation7_spill] sm:$0xff]  ;;  %v2451_v32 = vadd.f32 %v2218_v41, %v762_v21  ;;  %v875_v53 = vmax.f32 %v2350_v45, 0.0 }
 0x1bc   :  { %2760 = vst [vmem:[#allocation12_spill] sm:$0xff] %v2422_v1  ;;  %v2438_v20 = vadd.f32 %v2218_v41, %v2765_v56  ;;  %v2442_v25 = vadd.f32 %v2216_v4, %v2766_v59  ;;  %v2445_v1 = vadd.f32 %v2218_v41, %v760_v42  ;;  %v2454_v43 = vadd.f32 %v2216_v4, %v763_v6 }
 0x1bd   :  { %2764 = vst [vmem:[#allocation13_spill] sm:$0xff] %v2434_v52  ;;  %v2457_v52 = vadd.f32 %v2218_v41, %v764_v63  ;;  %v2460_v56 = vadd.f32 %v2216_v4, %v765_v26  ;;  %v2463_v59 = vadd.f32 %v2218_v41, %v766_v46  ;;  %v2466_v42 = vadd.f32 %v2216_v4, %v767_v57 }
 0x1be   :  { %v2472_v21 = vadd.f32 %v2216_v4, %v769_v24  ;;  %v2475_v6 = vadd.f32 %v2218_v41, %v770_v40  ;;  %v2478_v63 = vadd.f32 %v2216_v4, %v771_v22  ;;  %v2481_v26 = vadd.f32 %v2218_v41, %v772_v17  ;;  %2772 = vst [vmem:[#allocation19_spill] sm:$0xff] %v2511_v54 }
 0x1bf   :  { %v2484_v46 = vadd.f32 %v2216_v4, %v773_v3  ;;  %v2487_v57 = vadd.f32 %v2218_v41, %v774_v28  ;;  %v2493_v24 = vadd.f32 %v2218_v41, %v776_v36  ;;  %v2496_v40 = vadd.f32 %v2216_v4, %v777_v30  ;;  %v2774_v30 = vld [vmem:[#allocation32_spill] sm:$0xff] }
 0x1c0   :  { %v2499_v22 = vadd.f32 %v2218_v41, %v778_v12  ;;  %v2502_v17 = vadd.f32 %v2216_v4, %v779_v49  ;;  %v2505_v3 = vadd.f32 %v2218_v41, %v780_v58  ;;  %v2508_v28 = vadd.f32 %v2216_v4, %v781_v62  ;;  %v2775_v12 = vld [vmem:[#allocation33_spill] sm:$0xff] }
 0x1c1   :  { %2767 = vst [vmem:[#allocation14_spill] sm:$0xff] %v2496_v40  ;;  %v2514_v36 = vadd.f32 %v2216_v4, %v783_v18  ;;  %v797_v40 = vadd.f32 %v2218_v41, %v2774_v30  ;;  %v860_v49 = vmax.f32 %v2298_v14, 0.0  ;;  %v862_v58 = vmax.f32 %v2302_v11, 0.0 }
 0x1c2   :  { %2768 = vst [vmem:[#allocation15_spill] sm:$0xff] %v2499_v22  ;;  %2769 = vst [vmem:[#allocation16_spill] sm:$0xff] %v2502_v17  ;;  %v799_v22 = vadd.f32 %v2218_v41, %v2775_v12  ;;  %v865_v17 = vmax.f32 %v2310_v47, 0.0  ;;  %v866_v4 = vmax.f32 %v2314_v8, 0.0  ;;  %v869_v30 = vmax.f32 %v2326_v31, 0.0 }
 0x1c3   :  { %2770 = vst [vmem:[#allocation17_spill] sm:$0xff] %v2505_v3  ;;  %2771 = vst [vmem:[#allocation18_spill] sm:$0xff] %v2508_v28  ;;  %v861_v62 = vmax.f32 %v797_v40, 0.0  ;;  %v867_v28 = vmax.f32 %v2318_v27, 0.0  ;;  %v871_v54 = vmax.f32 %v2334_v33, 0.0  ;;  %v868_v14 = vmax.f32 %v2322_v2, 0.0 }
 0x1c4   :  { %2773 = vst [vmem:[#allocation20_spill] sm:$0xff] %v2514_v36  ;;  %v863_v18 = vmax.f32 %v799_v22, 0.0  ;;  %v924_v36 = vpack.c.bf16 %v862_v58, %v860_v49  ;;  %v926_v12 = vpack.c.bf16 %v866_v4, %v864_v44  ;;  %v870_v11 = vmax.f32 %v2330_v5, 0.0  ;;  %v2776_v49 = vld [vmem:[#allocation10_spill] sm:$0xff] }
 0x1c5   :  { %v927_v41 = vpack.c.bf16 %v867_v28, %v865_v17  ;;  %v929_v40 = vpack.c.bf16 %v871_v54, %v869_v30  ;;  %v873_v27 = vmax.f32 %v2342_v35, 0.0  ;;  %v872_v8 = vmax.f32 %v2338_v34, 0.0  ;;  %v2779_v30 = vld [vmem:[#allocation12_spill] sm:$0xff] }
 0x1c6   :  { %v925_v47 = vpack.c.bf16 %v863_v18, %v861_v62  ;;  %v2532_v3 = vpack.c.bf16 %v870_v11, %v868_v14  ;;  %v874_v31 = vmax.f32 %v2346_v39, 0.0  ;;  %v877_v33 = vmax.f32 %v2358_v51, 0.0  ;;  %v2777_v62 = vld [vmem:[#allocation8_spill] sm:$0xff]  ;;  %v2778_v18 = vld [vmem:[#allocation9_spill] sm:$0xff] }
 0x1c7   :  { %v2537_v22 = vpack.c.bf16 %v875_v53, %v873_v27  ;;  %v879_v2 = vmax.f32 %v2366_v61, 0.0  ;;  %v876_v5 = vmax.f32 %v2354_v48, 0.0  ;;  %v878_v17 = vmax.f32 %v2362_v55, 0.0  ;;  %v2781_v53 = vld [vmem:[#allocation13_spill] sm:$0xff] }
 0x1c8   :  { %1123 = vmatprep.mubr.bf16.mxu1 %v925_v47  ;;  %v2542_v35 = vpack.c.bf16 %v874_v31, %v872_v8  ;;  %v881_v45 = vmax.f32 %v2374_v7, 0.0  ;;  %v883_v34 = vmax.f32 %v2382_v16, 0.0  ;;  %v880_v39 = vmax.f32 %v2370_v0, 0.0 }
 0x1c9   :  { %1124 = vmatmul.mubr.bf16.vlgmr.msra.gmra.mrb[0].mxu1 %v924_v36  ;;  %v2547_v51 = vpack.c.bf16 %v879_v2, %v877_v33  ;;  %v2549_v28 = vpack.c.bf16 %v878_v17, %v876_v5  ;;  %v882_v61 = vmax.f32 %v2378_v13, 0.0  ;;  %v885_v48 = vmax.f32 %v2390_v37, 0.0 }
 0x1ca   :  { %1131 = vmatprep.mubr.bf16.mxu1 %v927_v41  ;;  %v2553_v54 = vpack.c.bf16 %v883_v34, %v881_v45  ;;  %v887_v55 = vmax.f32 %v2398_v29, 0.0  ;;  %v884_v36 = vmax.f32 %v2386_v19, 0.0  ;;  %v886_v7 = vmax.f32 %v2394_v23, 0.0  ;;  %v2780_v19 = vld [vmem:[#allocation11_spill] sm:$0xff] }
 0x1cb   :  { %v2558_v16 = vpack.c.bf16 %v882_v61, %v880_v39  ;;  %v889_v0 = vmax.f32 %v2406_v38, 0.0  ;;  %v891_v58 = vmax.f32 %v2776_v49, 0.0  ;;  %v888_v44 = vmax.f32 %v2777_v62, 0.0  ;;  %v2783_v49 = vld [vmem:[#allocation17_spill] sm:$0xff]  ;;  %v2785_v62 = vld [vmem:[#allocation16_spill] sm:$0xff] }
 0x1cc   :  { %v937_v4 = vpack.c.bf16 %v887_v55, %v885_v48  ;;  %v936_v13 = vpack.c.bf16 %v886_v7, %v884_v36  ;;  %v890_v37 = vmax.f32 %v2778_v18, 0.0  ;;  %v893_v41 = vmax.f32 %v2779_v30, 0.0  ;;  %v2782_v7 = vld [vmem:[#allocation15_spill] sm:$0xff]  ;;  %v2788_v30 = vld [vmem:[#allocation20_spill] sm:$0xff] }
 0x1cd   :  { %v939_v14 = vpack.c.bf16 %v891_v58, %v889_v0  ;;  %v895_v29 = vmax.f32 %v2430_v15, 0.0  ;;  %v892_v11 = vmax.f32 %v2780_v19, 0.0  ;;  %v894_v23 = vmax.f32 %v2426_v10, 0.0  ;;  %v2784_v58 = vld [vmem:[#allocation14_spill] sm:$0xff]  ;;  %v2786_v18 = vld [vmem:[#allocation19_spill] sm:$0xff] }
 0x1ce   :  { %v938_v47 = vpack.c.bf16 %v890_v37, %v888_v44  ;;  %v897_v38 = vmax.f32 %v2438_v20, 0.0  ;;  %v899_v27 = vmax.f32 %v2445_v1, 0.0  ;;  %v896_v8 = vmax.f32 %v2781_v53, 0.0  ;;  %v2787_v37 = vld [vmem:[#allocation18_spill] sm:$0xff] }
 0x1cf   :  { %v941_v31 = vpack.c.bf16 %v895_v29, %v893_v41  ;;  %v940_v33 = vpack.c.bf16 %v894_v23, %v892_v11  ;;  %v898_v2 = vmax.f32 %v2442_v25, 0.0  ;;  %v901_v5 = vmax.f32 %v2451_v32, 0.0  ;;  %v2789_v29 = vld [vmem:[#allocation39_spill] sm:$0xff] }
 0x1d0   :  { %v943_v17 = vpack.c.bf16 %v899_v27, %v897_v38  ;;  %v903_v15 = vmax.f32 %v2457_v52, 0.0  ;;  %v900_v45 = vmax.f32 %v2448_v60, 0.0  ;;  %v902_v10 = vmax.f32 %v2454_v43, 0.0 }
 0x1d1   :  { %1132 = vmatmul.mubr.bf16.gmra.mrb[4].mxu1 %v926_v12  ;;  %v942_v20 = vpack.c.bf16 %v898_v2, %v896_v8  ;;  %v905_v1 = vmax.f32 %v2463_v59, 0.0  ;;  %v907_v34 = vmax.f32 %v2469_v9, 0.0  ;;  %v904_v39 = vmax.f32 %v2460_v56, 0.0 }
 0x1d2   :  { %1139 = vmatprep.mubr.bf16.mxu1 %v929_v40  ;;  %v945_v61 = vpack.c.bf16 %v903_v15, %v901_v5  ;;  %v944_v25 = vpack.c.bf16 %v902_v10, %v900_v45  ;;  %v906_v32 = vmax.f32 %v2466_v42, 0.0  ;;  %v909_v12 = vmax.f32 %v2475_v6, 0.0 }
 0x1d3   :  { %v947_v48 = vpack.c.bf16 %v907_v34, %v905_v1  ;;  %v911_v52 = vmax.f32 %v2481_v26, 0.0  ;;  %v908_v60 = vmax.f32 %v2472_v21, 0.0  ;;  %v910_v43 = vmax.f32 %v2478_v63, 0.0 }
 0x1d4   :  { %v946_v40 = vpack.c.bf16 %v906_v32, %v904_v39  ;;  %v913_v59 = vmax.f32 %v2487_v57, 0.0  ;;  %v915_v9 = vmax.f32 %v2493_v24, 0.0  ;;  %v912_v56 = vmax.f32 %v2484_v46, 0.0 }
 0x1d5   :  { %v949_v55 = vpack.c.bf16 %v911_v52, %v909_v12  ;;  %v948_v36 = vpack.c.bf16 %v910_v43, %v908_v60  ;;  %v914_v42 = vmax.f32 %v2490_v50, 0.0  ;;  %v917_v6 = vmax.f32 %v2782_v7, 0.0 }
 0x1d6   :  { %v951_v0 = vpack.c.bf16 %v915_v9, %v913_v59  ;;  %v919_v26 = vmax.f32 %v2783_v49, 0.0  ;;  %v916_v21 = vmax.f32 %v2784_v58, 0.0  ;;  %v918_v63 = vmax.f32 %v2785_v62, 0.0 }
 0x1d7   :  { %v950_v44 = vpack.c.bf16 %v914_v42, %v912_v56  ;;  %v921_v57 = vmax.f32 %v2786_v18, 0.0  ;;  %v920_v24 = vmax.f32 %v2787_v37, 0.0  ;;  %v922_v46 = vmax.f32 %v2788_v30, 0.0 }
 0x1d8   :  { %v953_v41 = vpack.c.bf16 %v919_v26, %v917_v6  ;;  %v952_v50 = vpack.c.bf16 %v918_v63, %v916_v21  ;;  %v2790_v19 = vmax.f32 %v2789_v29, 0.0 }
 0x1d9   :  { %1140 = vmatmul.mubr.bf16.gmra.mrb[8].mxu1 %v2532_v3  ;;  %v954_v23 = vpack.c.bf16 %v922_v46, %v920_v24 }
 0x1da   :  { %1147 = vmatprep.mubr.bf16.mxu1 %v2537_v22  ;;  %v955_v11 = vpack.c.bf16 %v2790_v19, %v921_v57  ;;  %v2607_v22 = vld [vmem:[%s2658_s5] ss:$0 sm:$0xff]  ;;  %s1552_s5 = smov [#allocation2]  }
 0x1db   :  { %s1289_s19 = sshll.u32 %s1552_s5, 4  ;;  %s1290_s19 = int_to_ptr.vmem [resolvable:$true] %s1289_s19 }
 0x1dc   :  { %s1526_s20 = scalar_lea.vmem %s1290_s19, 4096  ;;  %p1531_p1 = scmp.lt.s32.totalorder %s1290_s19, %s1290_s19 }
 0x1dd   :  { %p1527_p0 = scmp.ne.s32.totalorder %s1290_s19, %s1526_s20  ;;  %p1532_p2 = scmp.lt.s32.totalorder %s1526_s20, %s1526_s20 }
 0x1df   :  { %p1533_p3 = por %p1532_p2, %p1531_p1 }
 0x1e1   :  { %1148 = vmatmul.mubr.bf16.gmra.mrb[12].mxu1 %v2542_v35  ;;  %p1534_p4 = pnand %p1533_p3, %p1527_p0 }
 0x1e2   :  { %1155 = vmatprep.mubr.bf16.mxu1 %v2547_v51 }
 0x1e9   :  { %1156 = vmatmul.mubr.bf16.gmra.mrb[16].mxu1 %v2549_v28 }
 0x1ea   :  { %1163 = vmatprep.mubr.bf16.mxu1 %v2553_v54 }
 0x1f1   :  { %1164 = vmatmul.mubr.bf16.gmra.mrb[20].mxu1 %v2558_v16 }
 0x1f2   :  { %1171 = vmatprep.mubr.bf16.mxu1 %v937_v4 }
 0x1f9   :  { %1172 = vmatmul.mubr.bf16.gmra.mrb[24].mxu1 %v936_v13 }
 0x1fa   :  { %1179 = vmatprep.mubr.bf16.mxu1 %v939_v14 }
 0x201   :  { %1180 = vmatmul.mubr.bf16.gmra.mrb[28].mxu1 %v938_v47 }
 0x202   :  { %1187 = vmatprep.mubr.bf16.mxu1 %v941_v31 }
 0x209   :  { %1188 = vmatmul.mubr.bf16.gmra.mrb[32].mxu1 %v940_v33 }
 0x20a   :  { %1195 = vmatprep.mubr.bf16.mxu1 %v943_v17 }
 0x211   :  { %1196 = vmatmul.mubr.bf16.gmra.mrb[36].mxu1 %v942_v20 }
 0x212   :  { %1203 = vmatprep.mubr.bf16.mxu1 %v945_v61 }
 0x219   :  { %1204 = vmatmul.mubr.bf16.gmra.mrb[40].mxu1 %v944_v25 }
 0x21a   :  { %1211 = vmatprep.mubr.bf16.mxu1 %v947_v48 }
 0x221   :  { %1212 = vmatmul.mubr.bf16.gmra.mrb[44].mxu1 %v946_v40 }
 0x222   :  { %1219 = vmatprep.mubr.bf16.mxu1 %v949_v55 }
 0x229   :  { %1220 = vmatmul.mubr.bf16.gmra.mrb[48].mxu1 %v948_v36 }
 0x22a   :  { %1227 = vmatprep.mubr.bf16.mxu1 %v951_v0 }
 0x231   :  { %1228 = vmatmul.mubr.bf16.gmra.mrb[52].mxu1 %v950_v44 }
 0x232   :  { %1235 = vmatprep.mubr.bf16.mxu1 %v953_v41 }
 0x239   :  { %1236 = vmatmul.mubr.bf16.gmra.mrb[56].mxu1 %v952_v50 }
 0x23a   :  { %1243 = vmatprep.mubr.bf16.mxu1 %v955_v11 }
 0x241   :  { %1244 = vmatmul.mubr.bf16.gmra.mrb[60].mxu1 %v954_v23 }
 0x29c   :  { %v1365_v3 = vpop.f32.mrb[0].mxu1 }
 0x29d   :  { %v1366_v35 = vpop.f32.mrb[1].mxu1 }
 0x29e   :  { %v1367_v51 = vadd.f32 %v1366_v35, %v1365_v3  ;;  %v1368_v28 = vpop.f32.mrb[2].mxu1 }
 0x29f   :  { %v1369_v54 = vpop.f32.mrb[3].mxu1 }
 0x2a0   :  { %v1126_v16 = vadd.f32 %v1367_v51, %v2607_v22  ;;  %v1370_v4 = vadd.f32 %v1369_v54, %v1368_v28 }
 0x2a2   :  { %1252 = vst [vmem:[#allocation2] sm:$0xff] %v1126_v16  ;;  %v1129_v13 = vadd.f32 %v1370_v4, %v2607_v22 }
 0x2a4   :  { %1253 = vst [vmem:[#allocation2 + $0x8] sm:$0xff] %v1129_v13  ;;  %v1371_v14 = vpop.f32.mrb[4].mxu1 }
 0x2a5   :  { %v1372_v47 = vpop.f32.mrb[5].mxu1 }
 0x2a6   :  { %v1373_v38 = vadd.f32 %v1372_v47, %v1371_v14  ;;  %v1374_v27 = vpop.f32.mrb[6].mxu1 }
 0x2a7   :  { %v1375_v53 = vpop.f32.mrb[7].mxu1 }
 0x2a8   :  { %v1134_v8 = vadd.f32 %v1373_v38, %v2607_v22  ;;  %v1376_v31 = vadd.f32 %v1375_v53, %v1374_v27 }
 0x2aa   :  { %1254 = vst [vmem:[#allocation2 + $0x10] sm:$0xff] %v1134_v8  ;;  %v1137_v33 = vadd.f32 %v1376_v31, %v2607_v22 }
 0x2ac   :  { %1255 = vst [vmem:[#allocation2 + $0x18] sm:$0xff] %v1137_v33  ;;  %v1377_v2 = vpop.f32.mrb[8].mxu1 }
 0x2ad   :  { %v1378_v5 = vpop.f32.mrb[9].mxu1 }
 0x2ae   :  { %v1379_v17 = vadd.f32 %v1378_v5, %v1377_v2  ;;  %v1380_v15 = vpop.f32.mrb[10].mxu1 }
 0x2af   :  { %v1381_v45 = vpop.f32.mrb[11].mxu1 }
 0x2b0   :  { %v1142_v10 = vadd.f32 %v1379_v17, %v2607_v22  ;;  %v1382_v20 = vadd.f32 %v1381_v45, %v1380_v15 }
 0x2b2   :  { %1256 = vst [vmem:[#allocation2 + $0x20] sm:$0xff] %v1142_v10  ;;  %v1145_v1 = vadd.f32 %v1382_v20, %v2607_v22 }
 0x2b4   :  { %1257 = vst [vmem:[#allocation2 + $0x28] sm:$0xff] %v1145_v1  ;;  %v1383_v34 = vpop.f32.mrb[12].mxu1 }
 0x2b5   :  { %v1384_v39 = vpop.f32.mrb[13].mxu1 }
 0x2b6   :  { %v1385_v61 = vadd.f32 %v1384_v39, %v1383_v34  ;;  %v1386_v25 = vpop.f32.mrb[14].mxu1 }
 0x2b7   :  { %v1387_v32 = vpop.f32.mrb[15].mxu1 }
 0x2b8   :  { %v1150_v12 = vadd.f32 %v1385_v61, %v2607_v22  ;;  %v1388_v48 = vadd.f32 %v1387_v32, %v1386_v25 }
 0x2ba   :  { %1258 = vst [vmem:[#allocation2 + $0x30] sm:$0xff] %v1150_v12  ;;  %v1153_v52 = vadd.f32 %v1388_v48, %v2607_v22 }
 0x2bc   :  { %1259 = vst [vmem:[#allocation2 + $0x38] sm:$0xff] %v1153_v52  ;;  %v1389_v60 = vpop.f32.mrb[16].mxu1 }
 0x2bd   :  { %v1390_v43 = vpop.f32.mrb[17].mxu1 }
 0x2be   :  { %v1391_v40 = vadd.f32 %v1390_v43, %v1389_v60  ;;  %v1392_v59 = vpop.f32.mrb[18].mxu1 }
 0x2bf   :  { %v1393_v9 = vpop.f32.mrb[19].mxu1 }
 0x2c0   :  { %v1158_v56 = vadd.f32 %v1391_v40, %v2607_v22  ;;  %v1394_v55 = vadd.f32 %v1393_v9, %v1392_v59 }
 0x2c2   :  { %1260 = vst [vmem:[#allocation2 + $0x40] sm:$0xff] %v1158_v56  ;;  %v1161_v36 = vadd.f32 %v1394_v55, %v2607_v22 }
 0x2c4   :  { %1261 = vst [vmem:[#allocation2 + $0x48] sm:$0xff] %v1161_v36  ;;  %v1395_v42 = vpop.f32.mrb[20].mxu1 }
 0x2c5   :  { %v1396_v7 = vpop.f32.mrb[21].mxu1 }
 0x2c6   :  { %v1397_v6 = vadd.f32 %v1396_v7, %v1395_v42  ;;  %v1398_v0 = vpop.f32.mrb[22].mxu1 }
 0x2c7   :  { %v1399_v49 = vpop.f32.mrb[23].mxu1 }
 0x2c8   :  { %v1166_v26 = vadd.f32 %v1397_v6, %v2607_v22  ;;  %v1400_v58 = vadd.f32 %v1399_v49, %v1398_v0 }
 0x2ca   :  { %1262 = vst [vmem:[#allocation2 + $0x50] sm:$0xff] %v1166_v26  ;;  %v1169_v21 = vadd.f32 %v1400_v58, %v2607_v22 }
 0x2cc   :  { %1263 = vst [vmem:[#allocation2 + $0x58] sm:$0xff] %v1169_v21  ;;  %v1401_v62 = vpop.f32.mrb[24].mxu1 }
 0x2cd   :  { %v1402_v63 = vpop.f32.mrb[25].mxu1 }
 0x2ce   :  { %v1403_v44 = vadd.f32 %v1402_v63, %v1401_v62  ;;  %v1404_v18 = vpop.f32.mrb[26].mxu1 }
 0x2cf   :  { %v1405_v57 = vpop.f32.mrb[27].mxu1 }
 0x2d0   :  { %v1174_v37 = vadd.f32 %v1403_v44, %v2607_v22  ;;  %v1406_v24 = vadd.f32 %v1405_v57, %v1404_v18 }
 0x2d2   :  { %1264 = vst [vmem:[#allocation2 + $0x60] sm:$0xff] %v1174_v37  ;;  %v1177_v30 = vadd.f32 %v1406_v24, %v2607_v22 }
 0x2d4   :  { %1265 = vst [vmem:[#allocation2 + $0x68] sm:$0xff] %v1177_v30  ;;  %v1407_v46 = vpop.f32.mrb[28].mxu1 }
 0x2d5   :  { %v1408_v41 = vpop.f32.mrb[29].mxu1 }
 0x2d6   :  { %v1409_v50 = vadd.f32 %v1408_v41, %v1407_v46  ;;  %v1410_v29 = vpop.f32.mrb[30].mxu1 }
 0x2d7   :  { %v1411_v19 = vpop.f32.mrb[31].mxu1 }
 0x2d8   :  { %v1182_v11 = vadd.f32 %v1409_v50, %v2607_v22  ;;  %v1412_v23 = vadd.f32 %v1411_v19, %v1410_v29 }
 0x2da   :  { %1266 = vst [vmem:[#allocation2 + $0x70] sm:$0xff] %v1182_v11  ;;  %v1185_v3 = vadd.f32 %v1412_v23, %v2607_v22 }
 0x2dc   :  { %1267 = vst [vmem:[#allocation2 + $0x78] sm:$0xff] %v1185_v3  ;;  %v1413_v35 = vpop.f32.mrb[32].mxu1 }
 0x2dd   :  { %v1414_v51 = vpop.f32.mrb[33].mxu1 }
 0x2de   :  { %v1415_v28 = vadd.f32 %v1414_v51, %v1413_v35  ;;  %v1416_v54 = vpop.f32.mrb[34].mxu1 }
 0x2df   :  { %v1417_v16 = vpop.f32.mrb[35].mxu1 }
 0x2e0   :  { %v1190_v4 = vadd.f32 %v1415_v28, %v2607_v22  ;;  %v1418_v13 = vadd.f32 %v1417_v16, %v1416_v54 }
 0x2e2   :  { %1268 = vst [vmem:[#allocation2 + $0x80] sm:$0xff] %v1190_v4  ;;  %v1193_v14 = vadd.f32 %v1418_v13, %v2607_v22 }
 0x2e4   :  { %1269 = vst [vmem:[#allocation2 + $0x88] sm:$0xff] %v1193_v14  ;;  %v1419_v47 = vpop.f32.mrb[36].mxu1 }
 0x2e5   :  { %v1420_v38 = vpop.f32.mrb[37].mxu1 }
 0x2e6   :  { %v1421_v27 = vadd.f32 %v1420_v38, %v1419_v47  ;;  %v1422_v53 = vpop.f32.mrb[38].mxu1 }
 0x2e7   :  { %v1423_v8 = vpop.f32.mrb[39].mxu1 }
 0x2e8   :  { %v1198_v31 = vadd.f32 %v1421_v27, %v2607_v22  ;;  %v1424_v33 = vadd.f32 %v1423_v8, %v1422_v53 }
 0x2ea   :  { %1270 = vst [vmem:[#allocation2 + $0x90] sm:$0xff] %v1198_v31  ;;  %v1201_v2 = vadd.f32 %v1424_v33, %v2607_v22 }
 0x2ec   :  { %1271 = vst [vmem:[#allocation2 + $0x98] sm:$0xff] %v1201_v2  ;;  %v1425_v5 = vpop.f32.mrb[40].mxu1 }
 0x2ed   :  { %v1426_v17 = vpop.f32.mrb[41].mxu1 }
 0x2ee   :  { %v1427_v15 = vadd.f32 %v1426_v17, %v1425_v5  ;;  %v1428_v45 = vpop.f32.mrb[42].mxu1 }
 0x2ef   :  { %v1429_v10 = vpop.f32.mrb[43].mxu1 }
 0x2f0   :  { %v1206_v20 = vadd.f32 %v1427_v15, %v2607_v22  ;;  %v1430_v1 = vadd.f32 %v1429_v10, %v1428_v45 }
 0x2f2   :  { %1272 = vst [vmem:[#allocation2 + $0xa0] sm:$0xff] %v1206_v20  ;;  %v1209_v34 = vadd.f32 %v1430_v1, %v2607_v22 }
 0x2f4   :  { %1273 = vst [vmem:[#allocation2 + $0xa8] sm:$0xff] %v1209_v34  ;;  %v1431_v39 = vpop.f32.mrb[44].mxu1 }
 0x2f5   :  { %v1432_v61 = vpop.f32.mrb[45].mxu1 }
 0x2f6   :  { %v1433_v25 = vadd.f32 %v1432_v61, %v1431_v39  ;;  %v1434_v32 = vpop.f32.mrb[46].mxu1 }
 0x2f7   :  { %v1435_v12 = vpop.f32.mrb[47].mxu1 }
 0x2f8   :  { %v1214_v48 = vadd.f32 %v1433_v25, %v2607_v22  ;;  %v1436_v52 = vadd.f32 %v1435_v12, %v1434_v32 }
 0x2fa   :  { %1274 = vst [vmem:[#allocation2 + $0xb0] sm:$0xff] %v1214_v48  ;;  %v1217_v60 = vadd.f32 %v1436_v52, %v2607_v22 }
 0x2fc   :  { %1275 = vst [vmem:[#allocation2 + $0xb8] sm:$0xff] %v1217_v60  ;;  %v1437_v43 = vpop.f32.mrb[48].mxu1 }
 0x2fd   :  { %v1438_v40 = vpop.f32.mrb[49].mxu1 }
 0x2fe   :  { %v1439_v59 = vadd.f32 %v1438_v40, %v1437_v43  ;;  %v1440_v9 = vpop.f32.mrb[50].mxu1 }
 0x2ff   :  { %v1441_v56 = vpop.f32.mrb[51].mxu1 }
 0x300   :  { %v1222_v55 = vadd.f32 %v1439_v59, %v2607_v22  ;;  %v1442_v36 = vadd.f32 %v1441_v56, %v1440_v9 }
 0x302   :  { %1276 = vst [vmem:[#allocation2 + $0xc0] sm:$0xff] %v1222_v55  ;;  %v1225_v42 = vadd.f32 %v1442_v36, %v2607_v22 }
 0x304   :  { %1277 = vst [vmem:[#allocation2 + $0xc8] sm:$0xff] %v1225_v42  ;;  %v1443_v7 = vpop.f32.mrb[52].mxu1 }
 0x305   :  { %v1444_v6 = vpop.f32.mrb[53].mxu1 }
 0x306   :  { %v1445_v0 = vadd.f32 %v1444_v6, %v1443_v7  ;;  %v1446_v49 = vpop.f32.mrb[54].mxu1 }
 0x307   :  { %v1447_v26 = vpop.f32.mrb[55].mxu1 }
 0x308   :  { %v1230_v58 = vadd.f32 %v1445_v0, %v2607_v22  ;;  %v1448_v21 = vadd.f32 %v1447_v26, %v1446_v49 }
 0x30a   :  { %1278 = vst [vmem:[#allocation2 + $0xd0] sm:$0xff] %v1230_v58  ;;  %v1233_v62 = vadd.f32 %v1448_v21, %v2607_v22 }
 0x30c   :  { %1279 = vst [vmem:[#allocation2 + $0xd8] sm:$0xff] %v1233_v62  ;;  %v1449_v63 = vpop.f32.mrb[56].mxu1 }
 0x30d   :  { %v1450_v44 = vpop.f32.mrb[57].mxu1 }
 0x30e   :  { %v1451_v18 = vadd.f32 %v1450_v44, %v1449_v63  ;;  %v1452_v57 = vpop.f32.mrb[58].mxu1 }
 0x30f   :  { %v1453_v37 = vpop.f32.mrb[59].mxu1 }
 0x310   :  { %v1238_v24 = vadd.f32 %v1451_v18, %v2607_v22  ;;  %v1454_v30 = vadd.f32 %v1453_v37, %v1452_v57 }
 0x312   :  { %1280 = vst [vmem:[#allocation2 + $0xe0] sm:$0xff] %v1238_v24  ;;  %v1241_v46 = vadd.f32 %v1454_v30, %v2607_v22 }
 0x314   :  { %1281 = vst [vmem:[#allocation2 + $0xe8] sm:$0xff] %v1241_v46  ;;  %v1455_v41 = vpop.f32.mrb[60].mxu1 }
 0x315   :  { %v1456_v50 = vpop.f32.mrb[61].mxu1 }
 0x316   :  { %v1457_v29 = vadd.f32 %v1456_v50, %v1455_v41  ;;  %v1458_v19 = vpop.f32.mrb[62].mxu1 }
 0x317   :  { %v1459_v11 = vpop.f32.mrb[63].mxu1 }
 0x318   :  { %v1246_v23 = vadd.f32 %v1457_v29, %v2607_v22  ;;  %v1460_v3 = vadd.f32 %v1459_v11, %v1458_v19 }
 0x31a   :  { %1282 = vst [vmem:[#allocation2 + $0xf0] sm:$0xff] %v1246_v23  ;;  %v1249_v35 = vadd.f32 %v1460_v3, %v2607_v22 }
 0x31c   :  { %1283 = vst [vmem:[#allocation2 + $0xf8] sm:$0xff] %v1249_v35 }
 0x31d   :  { %1537 = shalt.err (!%p1534_p4)
}
 0x31e   :  { %s1538_s23 = scalar_lea.hbm %s2659_s6, 4096 }
 0x31f   :  { %p1539_p5 = scmp.ne.s32.totalorder %s2659_s6, %s1538_s23  ;;  %p1542_p6 = scmp.lt.u32.totalorder %s1538_s23, %s2659_s6 }
 0x321   :  { %p1544_p7 = pnand %p1542_p6, %p1539_p5 }
 0x323   :  { %1547 = shalt.err (!%p1544_p7)
}
 0x324   :  { %s1553_s28 = smov 128   ;;  %s1554_s29 = smov 8  }
 0x325   :  { %1295 = dma.vmem_to_hbm [thread:$0]  %s1290_s19, 4096, %s2659_s6, [#allocation3], %s1553_s28, %s1553_s28, %s1554_s29  }
 0x326   :  { %1548 = dma.done.wait [#allocation3], 4096  }
 0x327   :  { %1549 = vsyncadd [#allocation3], 4294963200 }
 0x328   :  { %1299 = vsyncpa [#allocation3], 1 }

</bundles_post_ra>
